<compile_context>
chip_gen: v7x
topology: tpu7x:2x2x1
jax: 0.10.0
libtpu: 0.0.40
codegen_flags: <defaults>
</compile_context>

<pallas_src>
import functools

import jax
import jax.numpy as jnp
from jax import lax
from jax.experimental import pallas as pl
from jax.experimental.pallas import tpu as pltpu


def was_generator_kernel(
    x_ref,                          # (T*Bp, Din)   time-major, batch-flattened input
    wih0_ref, whh0_ref, b0_ref,     # (Din, 4H), (H, 4H), (1, 4H)   LSTM layer 0
    wih1_ref, whh1_ref, b1_ref,     # (H, 4H),   (H, 4H), (1, 4H)   LSTM layer 1
    w1_ref, bb1_ref,                # (H, Din),  (1, Din)           Linear(hidden -> in_dim)
    w2_ref, bb2_ref,                # (Din, Dout), (1, Dout)        Linear(in_dim -> out_dim)
    out_ref,                        # (T*Bp, Dout)
    gih0_ref,                       # scratch (T*Bp, 4H): hoisted layer-0 input projection
    h1seq_ref,                      # scratch (T*Bp, H):  per-step layer-1 hidden states
    *, seq_len, batch,              # static: T, padded batch (multiple of 8)
):
    H = whh0_ref.shape[0]

    # ---- Hoisted layer-0 input projection: one big MXU op, off the serial chain.
    gih0_ref[...] = (
        jnp.dot(x_ref[...], wih0_ref[...], preferred_element_type=jnp.float32)
        + b0_ref[...]
    )

    whh0 = whh0_ref[...]
    wih1 = wih1_ref[...]
    whh1 = whh1_ref[...]
    b1 = b1_ref[...]

    def gates(pre):
        # PyTorch gate order: i, f, g, o
        i = jax.nn.sigmoid(pre[:, 0 * H:1 * H])
        f = jax.nn.sigmoid(pre[:, 1 * H:2 * H])
        g = jnp.tanh(pre[:, 2 * H:3 * H])
        o = jax.nn.sigmoid(pre[:, 3 * H:4 * H])
        return i, f, g, o

    def step(t, carry):
        h0, c0, h1, c1 = carry
        row = pl.multiple_of(t * batch, 8)          # batch % 8 == 0 -> aligned slices

        # Layer 0: input part precomputed; only the recurrent matmul per step.
        pre0 = gih0_ref[pl.ds(row, batch), :] + jnp.dot(
            h0, whh0, preferred_element_type=jnp.float32)
        i0, f0, g0, o0 = gates(pre0)
        c0 = f0 * c0 + i0 * g0
        h0 = o0 * jnp.tanh(c0)

        # Layer 1.
        pre1 = (jnp.dot(h0, wih1, preferred_element_type=jnp.float32)
                + jnp.dot(h1, whh1, preferred_element_type=jnp.float32) + b1)
        i1, f1, g1, o1 = gates(pre1)
        c1 = f1 * c1 + i1 * g1
        h1 = o1 * jnp.tanh(c1)

        h1seq_ref[pl.ds(row, batch), :] = h1
        return h0, c0, h1, c1

    zeros = jnp.zeros((batch, H), jnp.float32)      # h_0 / c_0 are zeros
    lax.fori_loop(0, seq_len, step, (zeros, zeros, zeros, zeros), unroll=True)

    # ---- Hoisted linear head: two big matmuls + tanh + one dense slab store.
    z = (jnp.dot(h1seq_ref[...], w1_ref[...], preferred_element_type=jnp.float32)
         + bb1_ref[...])
    y = jnp.tanh(jnp.dot(z, w2_ref[...], preferred_element_type=jnp.float32)
                 + bb2_ref[...])
    out_ref[...] = y.astype(out_ref.dtype)


@jax.jit
def was_generator_forward(x, params):
    """x: (B, T, in_dim) float32. params: dict of pre-transposed weights."""
    B, T, Din = x.shape
    H = params["whh0"].shape[0]
    Dout = params["w2"].shape[1]

    # Pad batch to a multiple of 8 (sublane width): fills vreg sublanes / MXU rows and
    # makes every in-kernel (T, Bp) slice 8-aligned. Pad rows are sliced off at the end.
    Bp = max(8, ((B + 7) // 8) * 8)
    if Bp != B:
        x = jnp.pad(x, ((0, Bp - B), (0, 0), (0, 0)))
    # Transpose to time-major and flatten (T, Bp) -> T*Bp in one wrapper op.
    x2d = jnp.transpose(x, (1, 0, 2)).reshape(T * Bp, Din)

    vmem = pl.BlockSpec(memory_space=pltpu.MemorySpace.VMEM)
    out2d = pl.pallas_call(
        functools.partial(was_generator_kernel, seq_len=T, batch=Bp),
        out_shape=jax.ShapeDtypeStruct((T * Bp, Dout), jnp.float32),
        in_specs=[vmem] * 11,
        out_specs=vmem,
        scratch_shapes=[
            pltpu.VMEM((T * Bp, 4 * H), jnp.float32),   # hoisted input-projection gates
            pltpu.VMEM((T * Bp, H), jnp.float32),       # layer-1 hidden states
        ],
    )(
        x2d,
        params["wih0"], params["whh0"], params["b0"],
        params["wih1"], params["whh1"], params["b1"],
        params["w1"], params["bb1"],
        params["w2"], params["bb2"],
    )
    out = out2d.reshape(T, Bp, Dout)[:, :B, :]
    return jnp.transpose(out, (1, 0, 2))               # (B, T, Dout)


def init_params(key, in_dim, hidden_dim, out_dim):
    """Deterministic init mimicking PyTorch defaults (uniform(-k, k)), pre-transposed."""
    ks = jax.random.split(key, 12)
    k_lstm = 1.0 / jnp.sqrt(hidden_dim)

    def u(k, shape, bound):
        return jax.random.uniform(k, shape, jnp.float32, -bound, bound)

    # LSTM layer 0 (input size = in_dim), layer 1 (input size = hidden_dim)
    wih0 = u(ks[0], (4 * hidden_dim, in_dim), k_lstm).T             # (Din, 4H)
    whh0 = u(ks[1], (4 * hidden_dim, hidden_dim), k_lstm).T         # (H, 4H)
    b0 = (u(ks[2], (4 * hidden_dim,), k_lstm)
          + u(ks[3], (4 * hidden_dim,), k_lstm)).reshape(1, -1)     # b_ih + b_hh
    wih1 = u(ks[4], (4 * hidden_dim, hidden_dim), k_lstm).T
    whh1 = u(ks[5], (4 * hidden_dim, hidden_dim), k_lstm).T
    b1 = (u(ks[6], (4 * hidden_dim,), k_lstm)
          + u(ks[7], (4 * hidden_dim,), k_lstm)).reshape(1, -1)

    # Linear(hidden_dim -> in_dim), Linear(in_dim -> out_dim)
    k1 = 1.0 / jnp.sqrt(hidden_dim)
    k2 = 1.0 / jnp.sqrt(in_dim)
    w1 = u(ks[8], (in_dim, hidden_dim), k1).T                       # (H, Din)
    bb1 = u(ks[9], (in_dim,), k1).reshape(1, -1)
    w2 = u(ks[10], (out_dim, in_dim), k2).T                         # (Din, Dout)
    bb2 = u(ks[11], (out_dim,), k2).reshape(1, -1)

    return dict(wih0=wih0, whh0=whh0, b0=b0, wih1=wih1, whh1=whh1, b1=b1,
                w1=w1, bb1=bb1, w2=w2, bb2=bb2)


def reference_forward(x, p):
    """Pure-JAX reference of the PyTorch forward (for correctness check)."""
    B, T, Din = x.shape
    H = p["whh0"].shape[0]

    def cell(x_t, h, c, wih, whh, b):
        g = x_t @ wih + h @ whh + b
        i, f, gg, o = (jax.nn.sigmoid(g[:, :H]), jax.nn.sigmoid(g[:, H:2 * H]),
                       jnp.tanh(g[:, 2 * H:3 * H]), jax.nn.sigmoid(g[:, 3 * H:]))
        c = f * c + i * gg
        return o * jnp.tanh(c), c

    h0 = c0 = h1 = c1 = jnp.zeros((B, H), jnp.float32)
    outs = []
    for t in range(T):
        h0, c0 = cell(x[:, t], h0, c0, p["wih0"], p["whh0"], p["b0"])
        h1, c1 = cell(h0, h1, c1, p["wih1"], p["whh1"], p["b1"])
        z = h1 @ p["w1"] + p["bb1"]
        outs.append(jnp.tanh(z @ p["w2"] + p["bb2"]))
    return jnp.stack(outs, axis=1)


if __name__ == "__main__":
    # Small shapes consistent with the module (spec has in_dim=200, n_layers=2).
    B, T = 2, 8
    in_dim, hidden_dim, out_dim = 200, 32, 16

    key = jax.random.PRNGKey(0)
    k_x, k_p = jax.random.split(key)
    x = jax.random.normal(k_x, (B, T, in_dim), jnp.float32)
    params = init_params(k_p, in_dim, hidden_dim, out_dim)

    out = was_generator_forward(x, params)
    out = jax.block_until_ready(out)

    ref = reference_forward(x, params)
    assert out.shape == (B, T, out_dim)
    assert jnp.allclose(out, ref, atol=1e-2, rtol=1e-2), float(jnp.max(jnp.abs(out - ref)))
    print("KERNEL_OK")
</pallas_src>

<mosaic_0001>
module attributes {stable_mosaic.version = 11 : i64} {
  func.func @was_generator_kernel(%arg0: memref<64x200xf32, #tpu.memory_space<vmem>>, %arg1: memref<200x128xf32, #tpu.memory_space<vmem>>, %arg2: memref<32x128xf32, #tpu.memory_space<vmem>>, %arg3: memref<1x128xf32, #tpu.memory_space<vmem>>, %arg4: memref<32x128xf32, #tpu.memory_space<vmem>>, %arg5: memref<32x128xf32, #tpu.memory_space<vmem>>, %arg6: memref<1x128xf32, #tpu.memory_space<vmem>>, %arg7: memref<32x200xf32, #tpu.memory_space<vmem>>, %arg8: memref<1x200xf32, #tpu.memory_space<vmem>>, %arg9: memref<200x16xf32, #tpu.memory_space<vmem>>, %arg10: memref<1x16xf32, #tpu.memory_space<vmem>>, %arg11: memref<64x16xf32, #tpu.memory_space<vmem>>, %arg12: memref<64x128xf32, #tpu.memory_space<vmem>>, %arg13: memref<64x32xf32, #tpu.memory_space<vmem>>) attributes {dimension_semantics = [], scalar_prefetch = 0 : i64, scratch_operands = 2 : i64, tpu.core_type = #tpu.core_type<tc>} {
    %c0 = arith.constant 0 : index
    %c0_0 = arith.constant 0 : index
    %0 = vector.load %arg0[%c0, %c0_0] : memref<64x200xf32, #tpu.memory_space<vmem>>, vector<64x200xf32>
    %c0_1 = arith.constant 0 : index
    %c0_2 = arith.constant 0 : index
    %1 = vector.load %arg1[%c0_1, %c0_2] : memref<200x128xf32, #tpu.memory_space<vmem>>, vector<200x128xf32>
    %cst = arith.constant dense<0.000000e+00> : vector<64x128xf32>
    %2 = tpu.matmul %0, %1, %cst {dimension_numbers = #tpu.dot_dimension_numbers<[1], [0], [0], [1], [0, 0, 1, 1], [], []>} : vector<64x200xf32>, vector<200x128xf32>, vector<64x128xf32> -> vector<64x128xf32>
    %c0_3 = arith.constant 0 : index
    %c0_4 = arith.constant 0 : index
    %3 = vector.load %arg3[%c0_3, %c0_4] : memref<1x128xf32, #tpu.memory_space<vmem>>, vector<1x128xf32>
    %4 = vector.broadcast %3 : vector<1x128xf32> to vector<64x128xf32>
    %5 = arith.addf %2, %4 : vector<64x128xf32>
    %c0_5 = arith.constant 0 : index
    %c0_6 = arith.constant 0 : index
    %6 = vector.load %arg12[%c0_5, %c0_6] : memref<64x128xf32, #tpu.memory_space<vmem>>, vector<64x128xf32>
    tpu.vector_store %arg12[%c0_5, %c0_6], %5 {strides = array<i32>} : memref<64x128xf32, #tpu.memory_space<vmem>>, vector<64x128xf32>,
    %c0_7 = arith.constant 0 : index
    %c0_8 = arith.constant 0 : index
    %7 = vector.load %arg2[%c0_7, %c0_8] : memref<32x128xf32, #tpu.memory_space<vmem>>, vector<32x128xf32>
    %c0_9 = arith.constant 0 : index
    %c0_10 = arith.constant 0 : index
    %8 = vector.load %arg4[%c0_9, %c0_10] : memref<32x128xf32, #tpu.memory_space<vmem>>, vector<32x128xf32>
    %c0_11 = arith.constant 0 : index
    %c0_12 = arith.constant 0 : index
    %9 = vector.load %arg5[%c0_11, %c0_12] : memref<32x128xf32, #tpu.memory_space<vmem>>, vector<32x128xf32>
    %c0_13 = arith.constant 0 : index
    %c0_14 = arith.constant 0 : index
    %10 = vector.load %arg6[%c0_13, %c0_14] : memref<1x128xf32, #tpu.memory_space<vmem>>, vector<1x128xf32>
    %cst_15 = arith.constant 0.000000e+00 : f32
    %11 = vector.broadcast %cst_15 : f32 to vector<8x32xf32>
    %c0_i32 = arith.constant 0 : i32
    %c8_i32 = arith.constant 8 : i32
    %12 = arith.muli %c0_i32, %c8_i32 : i32
    %13 = tpu.assume_multiple %12, 8 : i32
    %14 = arith.index_cast %13 : i32 to index
    %c0_16 = arith.constant 0 : index
    %15 = vector.load %arg12[%14, %c0_16] : memref<64x128xf32, #tpu.memory_space<vmem>>, vector<8x128xf32>
    %cst_17 = arith.constant dense<0.000000e+00> : vector<8x128xf32>
    %16 = tpu.matmul %11, %7, %cst_17 {dimension_numbers = #tpu.dot_dimension_numbers<[1], [0], [0], [1], [0, 0, 1, 1], [], []>} : vector<8x32xf32>, vector<32x128xf32>, vector<8x128xf32> -> vector<8x128xf32>
    %17 = arith.addf %15, %16 : vector<8x128xf32>
    %18 = vector.extract_strided_slice %17 {offsets = [0, 0], sizes = [8, 32], strides = [1, 1]} : vector<8x128xf32> to vector<8x32xf32>
    %19 = arith.negf %18 : vector<8x32xf32>
    %20 = math.exp %19 : vector<8x32xf32>
    %cst_18 = arith.constant 1.000000e+00 : f32
    %21 = vector.broadcast %cst_18 : f32 to vector<8x32xf32>
    %22 = arith.addf %21, %20 : vector<8x32xf32>
    %23 = arith.divf %21, %22 : vector<8x32xf32>
    %24 = vector.extract_strided_slice %17 {offsets = [0, 32], sizes = [8, 32], strides = [1, 1]} : vector<8x128xf32> to vector<8x32xf32>
    %25 = arith.negf %24 : vector<8x32xf32>
    %26 = math.exp %25 : vector<8x32xf32>
    %cst_19 = arith.constant 1.000000e+00 : f32
    %27 = vector.broadcast %cst_19 : f32 to vector<8x32xf32>
    %28 = arith.addf %27, %26 : vector<8x32xf32>
    %29 = arith.divf %27, %28 : vector<8x32xf32>
    %30 = vector.extract_strided_slice %17 {offsets = [0, 64], sizes = [8, 32], strides = [1, 1]} : vector<8x128xf32> to vector<8x32xf32>
    %31 = math.tanh %30 : vector<8x32xf32>
    %32 = vector.extract_strided_slice %17 {offsets = [0, 96], sizes = [8, 32], strides = [1, 1]} : vector<8x128xf32> to vector<8x32xf32>
    %33 = arith.negf %32 : vector<8x32xf32>
    %34 = math.exp %33 : vector<8x32xf32>
    %cst_20 = arith.constant 1.000000e+00 : f32
    %35 = vector.broadcast %cst_20 : f32 to vector<8x32xf32>
    %36 = arith.addf %35, %34 : vector<8x32xf32>
    %37 = arith.divf %35, %36 : vector<8x32xf32>
    %38 = arith.mulf %29, %11 : vector<8x32xf32>
    %39 = arith.mulf %23, %31 : vector<8x32xf32>
    %40 = arith.addf %38, %39 : vector<8x32xf32>
    %41 = math.tanh %40 : vector<8x32xf32>
    %42 = arith.mulf %37, %41 : vector<8x32xf32>
    %cst_21 = arith.constant dense<0.000000e+00> : vector<8x128xf32>
    %43 = tpu.matmul %42, %8, %cst_21 {dimension_numbers = #tpu.dot_dimension_numbers<[1], [0], [0], [1], [0, 0, 1, 1], [], []>} : vector<8x32xf32>, vector<32x128xf32>, vector<8x128xf32> -> vector<8x128xf32>
    %cst_22 = arith.constant dense<0.000000e+00> : vector<8x128xf32>
    %44 = tpu.matmul %11, %9, %cst_22 {dimension_numbers = #tpu.dot_dimension_numbers<[1], [0], [0], [1], [0, 0, 1, 1], [], []>} : vector<8x32xf32>, vector<32x128xf32>, vector<8x128xf32> -> vector<8x128xf32>
    %45 = arith.addf %43, %44 : vector<8x128xf32>
    %46 = vector.broadcast %10 : vector<1x128xf32> to vector<8x128xf32>
    %47 = arith.addf %45, %46 : vector<8x128xf32>
    %48 = vector.extract_strided_slice %47 {offsets = [0, 0], sizes = [8, 32], strides = [1, 1]} : vector<8x128xf32> to vector<8x32xf32>
    %49 = arith.negf %48 : vector<8x32xf32>
    %50 = math.exp %49 : vector<8x32xf32>
    %cst_23 = arith.constant 1.000000e+00 : f32
    %51 = vector.broadcast %cst_23 : f32 to vector<8x32xf32>
    %52 = arith.addf %51, %50 : vector<8x32xf32>
    %53 = arith.divf %51, %52 : vector<8x32xf32>
    %54 = vector.extract_strided_slice %47 {offsets = [0, 32], sizes = [8, 32], strides = [1, 1]} : vector<8x128xf32> to vector<8x32xf32>
    %55 = arith.negf %54 : vector<8x32xf32>
    %56 = math.exp %55 : vector<8x32xf32>
    %cst_24 = arith.constant 1.000000e+00 : f32
    %57 = vector.broadcast %cst_24 : f32 to vector<8x32xf32>
    %58 = arith.addf %57, %56 : vector<8x32xf32>
    %59 = arith.divf %57, %58 : vector<8x32xf32>
    %60 = vector.extract_strided_slice %47 {offsets = [0, 64], sizes = [8, 32], strides = [1, 1]} : vector<8x128xf32> to vector<8x32xf32>
    %61 = math.tanh %60 : vector<8x32xf32>
    %62 = vector.extract_strided_slice %47 {offsets = [0, 96], sizes = [8, 32], strides = [1, 1]} : vector<8x128xf32> to vector<8x32xf32>
    %63 = arith.negf %62 : vector<8x32xf32>
    %64 = math.exp %63 : vector<8x32xf32>
    %cst_25 = arith.constant 1.000000e+00 : f32
    %65 = vector.broadcast %cst_25 : f32 to vector<8x32xf32>
    %66 = arith.addf %65, %64 : vector<8x32xf32>
    %67 = arith.divf %65, %66 : vector<8x32xf32>
    %68 = arith.mulf %59, %11 : vector<8x32xf32>
    %69 = arith.mulf %53, %61 : vector<8x32xf32>
    %70 = arith.addf %68, %69 : vector<8x32xf32>
    %71 = math.tanh %70 : vector<8x32xf32>
    %72 = arith.mulf %67, %71 : vector<8x32xf32>
    %73 = arith.index_cast %13 : i32 to index
    %c0_26 = arith.constant 0 : index
    %74 = vector.load %arg13[%73, %c0_26] : memref<64x32xf32, #tpu.memory_space<vmem>>, vector<8x32xf32>
    tpu.vector_store %arg13[%73, %c0_26], %72 {strides = array<i32>} : memref<64x32xf32, #tpu.memory_space<vmem>>, vector<8x32xf32>,
    %c1_i32 = arith.constant 1 : i32
    %c8_i32_27 = arith.constant 8 : i32
    %75 = arith.muli %c1_i32, %c8_i32_27 : i32
    %76 = tpu.assume_multiple %75, 8 : i32
    %77 = arith.index_cast %76 : i32 to index
    %c0_28 = arith.constant 0 : index
    %78 = vector.load %arg12[%77, %c0_28] : memref<64x128xf32, #tpu.memory_space<vmem>>, vector<8x128xf32>
    %cst_29 = arith.constant dense<0.000000e+00> : vector<8x128xf32>
    %79 = tpu.matmul %42, %7, %cst_29 {dimension_numbers = #tpu.dot_dimension_numbers<[1], [0], [0], [1], [0, 0, 1, 1], [], []>} : vector<8x32xf32>, vector<32x128xf32>, vector<8x128xf32> -> vector<8x128xf32>
    %80 = arith.addf %78, %79 : vector<8x128xf32>
    %81 = vector.extract_strided_slice %80 {offsets = [0, 0], sizes = [8, 32], strides = [1, 1]} : vector<8x128xf32> to vector<8x32xf32>
    %82 = arith.negf %81 : vector<8x32xf32>
    %83 = math.exp %82 : vector<8x32xf32>
    %cst_30 = arith.constant 1.000000e+00 : f32
    %84 = vector.broadcast %cst_30 : f32 to vector<8x32xf32>
    %85 = arith.addf %84, %83 : vector<8x32xf32>
    %86 = arith.divf %84, %85 : vector<8x32xf32>
    %87 = vector.extract_strided_slice %80 {offsets = [0, 32], sizes = [8, 32], strides = [1, 1]} : vector<8x128xf32> to vector<8x32xf32>
    %88 = arith.negf %87 : vector<8x32xf32>
    %89 = math.exp %88 : vector<8x32xf32>
    %cst_31 = arith.constant 1.000000e+00 : f32
    %90 = vector.broadcast %cst_31 : f32 to vector<8x32xf32>
    %91 = arith.addf %90, %89 : vector<8x32xf32>
    %92 = arith.divf %90, %91 : vector<8x32xf32>
    %93 = vector.extract_strided_slice %80 {offsets = [0, 64], sizes = [8, 32], strides = [1, 1]} : vector<8x128xf32> to vector<8x32xf32>
    %94 = math.tanh %93 : vector<8x32xf32>
    %95 = vector.extract_strided_slice %80 {offsets = [0, 96], sizes = [8, 32], strides = [1, 1]} : vector<8x128xf32> to vector<8x32xf32>
    %96 = arith.negf %95 : vector<8x32xf32>
    %97 = math.exp %96 : vector<8x32xf32>
    %cst_32 = arith.constant 1.000000e+00 : f32
    %98 = vector.broadcast %cst_32 : f32 to vector<8x32xf32>
    %99 = arith.addf %98, %97 : vector<8x32xf32>
    %100 = arith.divf %98, %99 : vector<8x32xf32>
    %101 = arith.mulf %92, %40 : vector<8x32xf32>
    %102 = arith.mulf %86, %94 : vector<8x32xf32>
    %103 = arith.addf %101, %102 : vector<8x32xf32>
    %104 = math.tanh %103 : vector<8x32xf32>
    %105 = arith.mulf %100, %104 : vector<8x32xf32>
    %cst_33 = arith.constant dense<0.000000e+00> : vector<8x128xf32>
    %106 = tpu.matmul %105, %8, %cst_33 {dimension_numbers = #tpu.dot_dimension_numbers<[1], [0], [0], [1], [0, 0, 1, 1], [], []>} : vector<8x32xf32>, vector<32x128xf32>, vector<8x128xf32> -> vector<8x128xf32>
    %cst_34 = arith.constant dense<0.000000e+00> : vector<8x128xf32>
    %107 = tpu.matmul %72, %9, %cst_34 {dimension_numbers = #tpu.dot_dimension_numbers<[1], [0], [0], [1], [0, 0, 1, 1], [], []>} : vector<8x32xf32>, vector<32x128xf32>, vector<8x128xf32> -> vector<8x128xf32>
    %108 = arith.addf %106, %107 : vector<8x128xf32>
    %109 = vector.broadcast %10 : vector<1x128xf32> to vector<8x128xf32>
    %110 = arith.addf %108, %109 : vector<8x128xf32>
    %111 = vector.extract_strided_slice %110 {offsets = [0, 0], sizes = [8, 32], strides = [1, 1]} : vector<8x128xf32> to vector<8x32xf32>
    %112 = arith.negf %111 : vector<8x32xf32>
    %113 = math.exp %112 : vector<8x32xf32>
    %cst_35 = arith.constant 1.000000e+00 : f32
    %114 = vector.broadcast %cst_35 : f32 to vector<8x32xf32>
    %115 = arith.addf %114, %113 : vector<8x32xf32>
    %116 = arith.divf %114, %115 : vector<8x32xf32>
    %117 = vector.extract_strided_slice %110 {offsets = [0, 32], sizes = [8, 32], strides = [1, 1]} : vector<8x128xf32> to vector<8x32xf32>
    %118 = arith.negf %117 : vector<8x32xf32>
    %119 = math.exp %118 : vector<8x32xf32>
    %cst_36 = arith.constant 1.000000e+00 : f32
    %120 = vector.broadcast %cst_36 : f32 to vector<8x32xf32>
    %121 = arith.addf %120, %119 : vector<8x32xf32>
    %122 = arith.divf %120, %121 : vector<8x32xf32>
    %123 = vector.extract_strided_slice %110 {offsets = [0, 64], sizes = [8, 32], strides = [1, 1]} : vector<8x128xf32> to vector<8x32xf32>
    %124 = math.tanh %123 : vector<8x32xf32>
    %125 = vector.extract_strided_slice %110 {offsets = [0, 96], sizes = [8, 32], strides = [1, 1]} : vector<8x128xf32> to vector<8x32xf32>
    %126 = arith.negf %125 : vector<8x32xf32>
    %127 = math.exp %126 : vector<8x32xf32>
    %cst_37 = arith.constant 1.000000e+00 : f32
    %128 = vector.broadcast %cst_37 : f32 to vector<8x32xf32>
    %129 = arith.addf %128, %127 : vector<8x32xf32>
    %130 = arith.divf %128, %129 : vector<8x32xf32>
    %131 = arith.mulf %122, %70 : vector<8x32xf32>
    %132 = arith.mulf %116, %124 : vector<8x32xf32>
    %133 = arith.addf %131, %132 : vector<8x32xf32>
    %134 = math.tanh %133 : vector<8x32xf32>
    %135 = arith.mulf %130, %134 : vector<8x32xf32>
    %136 = arith.index_cast %76 : i32 to index
    %c0_38 = arith.constant 0 : index
    %137 = vector.load %arg13[%136, %c0_38] : memref<64x32xf32, #tpu.memory_space<vmem>>, vector<8x32xf32>
    tpu.vector_store %arg13[%136, %c0_38], %135 {strides = array<i32>} : memref<64x32xf32, #tpu.memory_space<vmem>>, vector<8x32xf32>,
    %c2_i32 = arith.constant 2 : i32
    %c8_i32_39 = arith.constant 8 : i32
    %138 = arith.muli %c2_i32, %c8_i32_39 : i32
    %139 = tpu.assume_multiple %138, 8 : i32
    %140 = arith.index_cast %139 : i32 to index
    %c0_40 = arith.constant 0 : index
    %141 = vector.load %arg12[%140, %c0_40] : memref<64x128xf32, #tpu.memory_space<vmem>>, vector<8x128xf32>
    %cst_41 = arith.constant dense<0.000000e+00> : vector<8x128xf32>
    %142 = tpu.matmul %105, %7, %cst_41 {dimension_numbers = #tpu.dot_dimension_numbers<[1], [0], [0], [1], [0, 0, 1, 1], [], []>} : vector<8x32xf32>, vector<32x128xf32>, vector<8x128xf32> -> vector<8x128xf32>
    %143 = arith.addf %141, %142 : vector<8x128xf32>
    %144 = vector.extract_strided_slice %143 {offsets = [0, 0], sizes = [8, 32], strides = [1, 1]} : vector<8x128xf32> to vector<8x32xf32>
    %145 = arith.negf %144 : vector<8x32xf32>
    %146 = math.exp %145 : vector<8x32xf32>
    %cst_42 = arith.constant 1.000000e+00 : f32
    %147 = vector.broadcast %cst_42 : f32 to vector<8x32xf32>
    %148 = arith.addf %147, %146 : vector<8x32xf32>
    %149 = arith.divf %147, %148 : vector<8x32xf32>
    %150 = vector.extract_strided_slice %143 {offsets = [0, 32], sizes = [8, 32], strides = [1, 1]} : vector<8x128xf32> to vector<8x32xf32>
    %151 = arith.negf %150 : vector<8x32xf32>
    %152 = math.exp %151 : vector<8x32xf32>
    %cst_43 = arith.constant 1.000000e+00 : f32
    %153 = vector.broadcast %cst_43 : f32 to vector<8x32xf32>
    %154 = arith.addf %153, %152 : vector<8x32xf32>
    %155 = arith.divf %153, %154 : vector<8x32xf32>
    %156 = vector.extract_strided_slice %143 {offsets = [0, 64], sizes = [8, 32], strides = [1, 1]} : vector<8x128xf32> to vector<8x32xf32>
    %157 = math.tanh %156 : vector<8x32xf32>
    %158 = vector.extract_strided_slice %143 {offsets = [0, 96], sizes = [8, 32], strides = [1, 1]} : vector<8x128xf32> to vector<8x32xf32>
    %159 = arith.negf %158 : vector<8x32xf32>
    %160 = math.exp %159 : vector<8x32xf32>
    %cst_44 = arith.constant 1.000000e+00 : f32
    %161 = vector.broadcast %cst_44 : f32 to vector<8x32xf32>
    %162 = arith.addf %161, %160 : vector<8x32xf32>
    %163 = arith.divf %161, %162 : vector<8x32xf32>
    %164 = arith.mulf %155, %103 : vector<8x32xf32>
    %165 = arith.mulf %149, %157 : vector<8x32xf32>
    %166 = arith.addf %164, %165 : vector<8x32xf32>
    %167 = math.tanh %166 : vector<8x32xf32>
    %168 = arith.mulf %163, %167 : vector<8x32xf32>
    %cst_45 = arith.constant dense<0.000000e+00> : vector<8x128xf32>
    %169 = tpu.matmul %168, %8, %cst_45 {dimension_numbers = #tpu.dot_dimension_numbers<[1], [0], [0], [1], [0, 0, 1, 1], [], []>} : vector<8x32xf32>, vector<32x128xf32>, vector<8x128xf32> -> vector<8x128xf32>
    %cst_46 = arith.constant dense<0.000000e+00> : vector<8x128xf32>
    %170 = tpu.matmul %135, %9, %cst_46 {dimension_numbers = #tpu.dot_dimension_numbers<[1], [0], [0], [1], [0, 0, 1, 1], [], []>} : vector<8x32xf32>, vector<32x128xf32>, vector<8x128xf32> -> vector<8x128xf32>
    %171 = arith.addf %169, %170 : vector<8x128xf32>
    %172 = vector.broadcast %10 : vector<1x128xf32> to vector<8x128xf32>
    %173 = arith.addf %171, %172 : vector<8x128xf32>
    %174 = vector.extract_strided_slice %173 {offsets = [0, 0], sizes = [8, 32], strides = [1, 1]} : vector<8x128xf32> to vector<8x32xf32>
    %175 = arith.negf %174 : vector<8x32xf32>
    %176 = math.exp %175 : vector<8x32xf32>
    %cst_47 = arith.constant 1.000000e+00 : f32
    %177 = vector.broadcast %cst_47 : f32 to vector<8x32xf32>
    %178 = arith.addf %177, %176 : vector<8x32xf32>
    %179 = arith.divf %177, %178 : vector<8x32xf32>
    %180 = vector.extract_strided_slice %173 {offsets = [0, 32], sizes = [8, 32], strides = [1, 1]} : vector<8x128xf32> to vector<8x32xf32>
    %181 = arith.negf %180 : vector<8x32xf32>
    %182 = math.exp %181 : vector<8x32xf32>
    %cst_48 = arith.constant 1.000000e+00 : f32
    %183 = vector.broadcast %cst_48 : f32 to vector<8x32xf32>
    %184 = arith.addf %183, %182 : vector<8x32xf32>
    %185 = arith.divf %183, %184 : vector<8x32xf32>
    %186 = vector.extract_strided_slice %173 {offsets = [0, 64], sizes = [8, 32], strides = [1, 1]} : vector<8x128xf32> to vector<8x32xf32>
    %187 = math.tanh %186 : vector<8x32xf32>
    %188 = vector.extract_strided_slice %173 {offsets = [0, 96], sizes = [8, 32], strides = [1, 1]} : vector<8x128xf32> to vector<8x32xf32>
    %189 = arith.negf %188 : vector<8x32xf32>
    %190 = math.exp %189 : vector<8x32xf32>
    %cst_49 = arith.constant 1.000000e+00 : f32
    %191 = vector.broadcast %cst_49 : f32 to vector<8x32xf32>
    %192 = arith.addf %191, %190 : vector<8x32xf32>
    %193 = arith.divf %191, %192 : vector<8x32xf32>
    %194 = arith.mulf %185, %133 : vector<8x32xf32>
    %195 = arith.mulf %179, %187 : vector<8x32xf32>
    %196 = arith.addf %194, %195 : vector<8x32xf32>
    %197 = math.tanh %196 : vector<8x32xf32>
    %198 = arith.mulf %193, %197 : vector<8x32xf32>
    %199 = arith.index_cast %139 : i32 to index
    %c0_50 = arith.constant 0 : index
    %200 = vector.load %arg13[%199, %c0_50] : memref<64x32xf32, #tpu.memory_space<vmem>>, vector<8x32xf32>
    tpu.vector_store %arg13[%199, %c0_50], %198 {strides = array<i32>} : memref<64x32xf32, #tpu.memory_space<vmem>>, vector<8x32xf32>,
    %c3_i32 = arith.constant 3 : i32
    %c8_i32_51 = arith.constant 8 : i32
    %201 = arith.muli %c3_i32, %c8_i32_51 : i32
    %202 = tpu.assume_multiple %201, 8 : i32
    %203 = arith.index_cast %202 : i32 to index
    %c0_52 = arith.constant 0 : index
    %204 = vector.load %arg12[%203, %c0_52] : memref<64x128xf32, #tpu.memory_space<vmem>>, vector<8x128xf32>
    %cst_53 = arith.constant dense<0.000000e+00> : vector<8x128xf32>
    %205 = tpu.matmul %168, %7, %cst_53 {dimension_numbers = #tpu.dot_dimension_numbers<[1], [0], [0], [1], [0, 0, 1, 1], [], []>} : vector<8x32xf32>, vector<32x128xf32>, vector<8x128xf32> -> vector<8x128xf32>
    %206 = arith.addf %204, %205 : vector<8x128xf32>
    %207 = vector.extract_strided_slice %206 {offsets = [0, 0], sizes = [8, 32], strides = [1, 1]} : vector<8x128xf32> to vector<8x32xf32>
    %208 = arith.negf %207 : vector<8x32xf32>
    %209 = math.exp %208 : vector<8x32xf32>
    %cst_54 = arith.constant 1.000000e+00 : f32
    %210 = vector.broadcast %cst_54 : f32 to vector<8x32xf32>
    %211 = arith.addf %210, %209 : vector<8x32xf32>
    %212 = arith.divf %210, %211 : vector<8x32xf32>
    %213 = vector.extract_strided_slice %206 {offsets = [0, 32], sizes = [8, 32], strides = [1, 1]} : vector<8x128xf32> to vector<8x32xf32>
    %214 = arith.negf %213 : vector<8x32xf32>
    %215 = math.exp %214 : vector<8x32xf32>
    %cst_55 = arith.constant 1.000000e+00 : f32
    %216 = vector.broadcast %cst_55 : f32 to vector<8x32xf32>
    %217 = arith.addf %216, %215 : vector<8x32xf32>
    %218 = arith.divf %216, %217 : vector<8x32xf32>
    %219 = vector.extract_strided_slice %206 {offsets = [0, 64], sizes = [8, 32], strides = [1, 1]} : vector<8x128xf32> to vector<8x32xf32>
    %220 = math.tanh %219 : vector<8x32xf32>
    %221 = vector.extract_strided_slice %206 {offsets = [0, 96], sizes = [8, 32], strides = [1, 1]} : vector<8x128xf32> to vector<8x32xf32>
    %222 = arith.negf %221 : vector<8x32xf32>
    %223 = math.exp %222 : vector<8x32xf32>
    %cst_56 = arith.constant 1.000000e+00 : f32
    %224 = vector.broadcast %cst_56 : f32 to vector<8x32xf32>
    %225 = arith.addf %224, %223 : vector<8x32xf32>
    %226 = arith.divf %224, %225 : vector<8x32xf32>
    %227 = arith.mulf %218, %166 : vector<8x32xf32>
    %228 = arith.mulf %212, %220 : vector<8x32xf32>
    %229 = arith.addf %227, %228 : vector<8x32xf32>
    %230 = math.tanh %229 : vector<8x32xf32>
    %231 = arith.mulf %226, %230 : vector<8x32xf32>
    %cst_57 = arith.constant dense<0.000000e+00> : vector<8x128xf32>
    %232 = tpu.matmul %231, %8, %cst_57 {dimension_numbers = #tpu.dot_dimension_numbers<[1], [0], [0], [1], [0, 0, 1, 1], [], []>} : vector<8x32xf32>, vector<32x128xf32>, vector<8x128xf32> -> vector<8x128xf32>
    %cst_58 = arith.constant dense<0.000000e+00> : vector<8x128xf32>
    %233 = tpu.matmul %198, %9, %cst_58 {dimension_numbers = #tpu.dot_dimension_numbers<[1], [0], [0], [1], [0, 0, 1, 1], [], []>} : vector<8x32xf32>, vector<32x128xf32>, vector<8x128xf32> -> vector<8x128xf32>
    %234 = arith.addf %232, %233 : vector<8x128xf32>
    %235 = vector.broadcast %10 : vector<1x128xf32> to vector<8x128xf32>
    %236 = arith.addf %234, %235 : vector<8x128xf32>
    %237 = vector.extract_strided_slice %236 {offsets = [0, 0], sizes = [8, 32], strides = [1, 1]} : vector<8x128xf32> to vector<8x32xf32>
    %238 = arith.negf %237 : vector<8x32xf32>
    %239 = math.exp %238 : vector<8x32xf32>
    %cst_59 = arith.constant 1.000000e+00 : f32
    %240 = vector.broadcast %cst_59 : f32 to vector<8x32xf32>
    %241 = arith.addf %240, %239 : vector<8x32xf32>
    %242 = arith.divf %240, %241 : vector<8x32xf32>
    %243 = vector.extract_strided_slice %236 {offsets = [0, 32], sizes = [8, 32], strides = [1, 1]} : vector<8x128xf32> to vector<8x32xf32>
    %244 = arith.negf %243 : vector<8x32xf32>
    %245 = math.exp %244 : vector<8x32xf32>
    %cst_60 = arith.constant 1.000000e+00 : f32
    %246 = vector.broadcast %cst_60 : f32 to vector<8x32xf32>
    %247 = arith.addf %246, %245 : vector<8x32xf32>
    %248 = arith.divf %246, %247 : vector<8x32xf32>
    %249 = vector.extract_strided_slice %236 {offsets = [0, 64], sizes = [8, 32], strides = [1, 1]} : vector<8x128xf32> to vector<8x32xf32>
    %250 = math.tanh %249 : vector<8x32xf32>
    %251 = vector.extract_strided_slice %236 {offsets = [0, 96], sizes = [8, 32], strides = [1, 1]} : vector<8x128xf32> to vector<8x32xf32>
    %252 = arith.negf %251 : vector<8x32xf32>
    %253 = math.exp %252 : vector<8x32xf32>
    %cst_61 = arith.constant 1.000000e+00 : f32
    %254 = vector.broadcast %cst_61 : f32 to vector<8x32xf32>
    %255 = arith.addf %254, %253 : vector<8x32xf32>
    %256 = arith.divf %254, %255 : vector<8x32xf32>
    %257 = arith.mulf %248, %196 : vector<8x32xf32>
    %258 = arith.mulf %242, %250 : vector<8x32xf32>
    %259 = arith.addf %257, %258 : vector<8x32xf32>
    %260 = math.tanh %259 : vector<8x32xf32>
    %261 = arith.mulf %256, %260 : vector<8x32xf32>
    %262 = arith.index_cast %202 : i32 to index
    %c0_62 = arith.constant 0 : index
    %263 = vector.load %arg13[%262, %c0_62] : memref<64x32xf32, #tpu.memory_space<vmem>>, vector<8x32xf32>
    tpu.vector_store %arg13[%262, %c0_62], %261 {strides = array<i32>} : memref<64x32xf32, #tpu.memory_space<vmem>>, vector<8x32xf32>,
    %c4_i32 = arith.constant 4 : i32
    %c8_i32_63 = arith.constant 8 : i32
    %264 = arith.muli %c4_i32, %c8_i32_63 : i32
    %265 = tpu.assume_multiple %264, 8 : i32
    %266 = arith.index_cast %265 : i32 to index
    %c0_64 = arith.constant 0 : index
    %267 = vector.load %arg12[%266, %c0_64] : memref<64x128xf32, #tpu.memory_space<vmem>>, vector<8x128xf32>
    %cst_65 = arith.constant dense<0.000000e+00> : vector<8x128xf32>
    %268 = tpu.matmul %231, %7, %cst_65 {dimension_numbers = #tpu.dot_dimension_numbers<[1], [0], [0], [1], [0, 0, 1, 1], [], []>} : vector<8x32xf32>, vector<32x128xf32>, vector<8x128xf32> -> vector<8x128xf32>
    %269 = arith.addf %267, %268 : vector<8x128xf32>
    %270 = vector.extract_strided_slice %269 {offsets = [0, 0], sizes = [8, 32], strides = [1, 1]} : vector<8x128xf32> to vector<8x32xf32>
    %271 = arith.negf %270 : vector<8x32xf32>
    %272 = math.exp %271 : vector<8x32xf32>
    %cst_66 = arith.constant 1.000000e+00 : f32
    %273 = vector.broadcast %cst_66 : f32 to vector<8x32xf32>
    %274 = arith.addf %273, %272 : vector<8x32xf32>
    %275 = arith.divf %273, %274 : vector<8x32xf32>
    %276 = vector.extract_strided_slice %269 {offsets = [0, 32], sizes = [8, 32], strides = [1, 1]} : vector<8x128xf32> to vector<8x32xf32>
    %277 = arith.negf %276 : vector<8x32xf32>
    %278 = math.exp %277 : vector<8x32xf32>
    %cst_67 = arith.constant 1.000000e+00 : f32
    %279 = vector.broadcast %cst_67 : f32 to vector<8x32xf32>
    %280 = arith.addf %279, %278 : vector<8x32xf32>
    %281 = arith.divf %279, %280 : vector<8x32xf32>
    %282 = vector.extract_strided_slice %269 {offsets = [0, 64], sizes = [8, 32], strides = [1, 1]} : vector<8x128xf32> to vector<8x32xf32>
    %283 = math.tanh %282 : vector<8x32xf32>
    %284 = vector.extract_strided_slice %269 {offsets = [0, 96], sizes = [8, 32], strides = [1, 1]} : vector<8x128xf32> to vector<8x32xf32>
    %285 = arith.negf %284 : vector<8x32xf32>
    %286 = math.exp %285 : vector<8x32xf32>
    %cst_68 = arith.constant 1.000000e+00 : f32
    %287 = vector.broadcast %cst_68 : f32 to vector<8x32xf32>
    %288 = arith.addf %287, %286 : vector<8x32xf32>
    %289 = arith.divf %287, %288 : vector<8x32xf32>
    %290 = arith.mulf %281, %229 : vector<8x32xf32>
    %291 = arith.mulf %275, %283 : vector<8x32xf32>
    %292 = arith.addf %290, %291 : vector<8x32xf32>
    %293 = math.tanh %292 : vector<8x32xf32>
    %294 = arith.mulf %289, %293 : vector<8x32xf32>
    %cst_69 = arith.constant dense<0.000000e+00> : vector<8x128xf32>
    %295 = tpu.matmul %294, %8, %cst_69 {dimension_numbers = #tpu.dot_dimension_numbers<[1], [0], [0], [1], [0, 0, 1, 1], [], []>} : vector<8x32xf32>, vector<32x128xf32>, vector<8x128xf32> -> vector<8x128xf32>
    %cst_70 = arith.constant dense<0.000000e+00> : vector<8x128xf32>
    %296 = tpu.matmul %261, %9, %cst_70 {dimension_numbers = #tpu.dot_dimension_numbers<[1], [0], [0], [1], [0, 0, 1, 1], [], []>} : vector<8x32xf32>, vector<32x128xf32>, vector<8x128xf32> -> vector<8x128xf32>
    %297 = arith.addf %295, %296 : vector<8x128xf32>
    %298 = vector.broadcast %10 : vector<1x128xf32> to vector<8x128xf32>
    %299 = arith.addf %297, %298 : vector<8x128xf32>
    %300 = vector.extract_strided_slice %299 {offsets = [0, 0], sizes = [8, 32], strides = [1, 1]} : vector<8x128xf32> to vector<8x32xf32>
    %301 = arith.negf %300 : vector<8x32xf32>
    %302 = math.exp %301 : vector<8x32xf32>
    %cst_71 = arith.constant 1.000000e+00 : f32
    %303 = vector.broadcast %cst_71 : f32 to vector<8x32xf32>
    %304 = arith.addf %303, %302 : vector<8x32xf32>
    %305 = arith.divf %303, %304 : vector<8x32xf32>
    %306 = vector.extract_strided_slice %299 {offsets = [0, 32], sizes = [8, 32], strides = [1, 1]} : vector<8x128xf32> to vector<8x32xf32>
    %307 = arith.negf %306 : vector<8x32xf32>
    %308 = math.exp %307 : vector<8x32xf32>
    %cst_72 = arith.constant 1.000000e+00 : f32
    %309 = vector.broadcast %cst_72 : f32 to vector<8x32xf32>
    %310 = arith.addf %309, %308 : vector<8x32xf32>
    %311 = arith.divf %309, %310 : vector<8x32xf32>
    %312 = vector.extract_strided_slice %299 {offsets = [0, 64], sizes = [8, 32], strides = [1, 1]} : vector<8x128xf32> to vector<8x32xf32>
    %313 = math.tanh %312 : vector<8x32xf32>
    %314 = vector.extract_strided_slice %299 {offsets = [0, 96], sizes = [8, 32], strides = [1, 1]} : vector<8x128xf32> to vector<8x32xf32>
    %315 = arith.negf %314 : vector<8x32xf32>
    %316 = math.exp %315 : vector<8x32xf32>
    %cst_73 = arith.constant 1.000000e+00 : f32
    %317 = vector.broadcast %cst_73 : f32 to vector<8x32xf32>
    %318 = arith.addf %317, %316 : vector<8x32xf32>
    %319 = arith.divf %317, %318 : vector<8x32xf32>
    %320 = arith.mulf %311, %259 : vector<8x32xf32>
    %321 = arith.mulf %305, %313 : vector<8x32xf32>
    %322 = arith.addf %320, %321 : vector<8x32xf32>
    %323 = math.tanh %322 : vector<8x32xf32>
    %324 = arith.mulf %319, %323 : vector<8x32xf32>
    %325 = arith.index_cast %265 : i32 to index
    %c0_74 = arith.constant 0 : index
    %326 = vector.load %arg13[%325, %c0_74] : memref<64x32xf32, #tpu.memory_space<vmem>>, vector<8x32xf32>
    tpu.vector_store %arg13[%325, %c0_74], %324 {strides = array<i32>} : memref<64x32xf32, #tpu.memory_space<vmem>>, vector<8x32xf32>,
    %c5_i32 = arith.constant 5 : i32
    %c8_i32_75 = arith.constant 8 : i32
    %327 = arith.muli %c5_i32, %c8_i32_75 : i32
    %328 = tpu.assume_multiple %327, 8 : i32
    %329 = arith.index_cast %328 : i32 to index
    %c0_76 = arith.constant 0 : index
    %330 = vector.load %arg12[%329, %c0_76] : memref<64x128xf32, #tpu.memory_space<vmem>>, vector<8x128xf32>
    %cst_77 = arith.constant dense<0.000000e+00> : vector<8x128xf32>
    %331 = tpu.matmul %294, %7, %cst_77 {dimension_numbers = #tpu.dot_dimension_numbers<[1], [0], [0], [1], [0, 0, 1, 1], [], []>} : vector<8x32xf32>, vector<32x128xf32>, vector<8x128xf32> -> vector<8x128xf32>
    %332 = arith.addf %330, %331 : vector<8x128xf32>
    %333 = vector.extract_strided_slice %332 {offsets = [0, 0], sizes = [8, 32], strides = [1, 1]} : vector<8x128xf32> to vector<8x32xf32>
    %334 = arith.negf %333 : vector<8x32xf32>
    %335 = math.exp %334 : vector<8x32xf32>
    %cst_78 = arith.constant 1.000000e+00 : f32
    %336 = vector.broadcast %cst_78 : f32 to vector<8x32xf32>
    %337 = arith.addf %336, %335 : vector<8x32xf32>
    %338 = arith.divf %336, %337 : vector<8x32xf32>
    %339 = vector.extract_strided_slice %332 {offsets = [0, 32], sizes = [8, 32], strides = [1, 1]} : vector<8x128xf32> to vector<8x32xf32>
    %340 = arith.negf %339 : vector<8x32xf32>
    %341 = math.exp %340 : vector<8x32xf32>
    %cst_79 = arith.constant 1.000000e+00 : f32
    %342 = vector.broadcast %cst_79 : f32 to vector<8x32xf32>
    %343 = arith.addf %342, %341 : vector<8x32xf32>
    %344 = arith.divf %342, %343 : vector<8x32xf32>
    %345 = vector.extract_strided_slice %332 {offsets = [0, 64], sizes = [8, 32], strides = [1, 1]} : vector<8x128xf32> to vector<8x32xf32>
    %346 = math.tanh %345 : vector<8x32xf32>
    %347 = vector.extract_strided_slice %332 {offsets = [0, 96], sizes = [8, 32], strides = [1, 1]} : vector<8x128xf32> to vector<8x32xf32>
    %348 = arith.negf %347 : vector<8x32xf32>
    %349 = math.exp %348 : vector<8x32xf32>
    %cst_80 = arith.constant 1.000000e+00 : f32
    %350 = vector.broadcast %cst_80 : f32 to vector<8x32xf32>
    %351 = arith.addf %350, %349 : vector<8x32xf32>
    %352 = arith.divf %350, %351 : vector<8x32xf32>
    %353 = arith.mulf %344, %292 : vector<8x32xf32>
    %354 = arith.mulf %338, %346 : vector<8x32xf32>
    %355 = arith.addf %353, %354 : vector<8x32xf32>
    %356 = math.tanh %355 : vector<8x32xf32>
    %357 = arith.mulf %352, %356 : vector<8x32xf32>
    %cst_81 = arith.constant dense<0.000000e+00> : vector<8x128xf32>
    %358 = tpu.matmul %357, %8, %cst_81 {dimension_numbers = #tpu.dot_dimension_numbers<[1], [0], [0], [1], [0, 0, 1, 1], [], []>} : vector<8x32xf32>, vector<32x128xf32>, vector<8x128xf32> -> vector<8x128xf32>
    %cst_82 = arith.constant dense<0.000000e+00> : vector<8x128xf32>
    %359 = tpu.matmul %324, %9, %cst_82 {dimension_numbers = #tpu.dot_dimension_numbers<[1], [0], [0], [1], [0, 0, 1, 1], [], []>} : vector<8x32xf32>, vector<32x128xf32>, vector<8x128xf32> -> vector<8x128xf32>
    %360 = arith.addf %358, %359 : vector<8x128xf32>
    %361 = vector.broadcast %10 : vector<1x128xf32> to vector<8x128xf32>
    %362 = arith.addf %360, %361 : vector<8x128xf32>
    %363 = vector.extract_strided_slice %362 {offsets = [0, 0], sizes = [8, 32], strides = [1, 1]} : vector<8x128xf32> to vector<8x32xf32>
    %364 = arith.negf %363 : vector<8x32xf32>
    %365 = math.exp %364 : vector<8x32xf32>
    %cst_83 = arith.constant 1.000000e+00 : f32
    %366 = vector.broadcast %cst_83 : f32 to vector<8x32xf32>
    %367 = arith.addf %366, %365 : vector<8x32xf32>
    %368 = arith.divf %366, %367 : vector<8x32xf32>
    %369 = vector.extract_strided_slice %362 {offsets = [0, 32], sizes = [8, 32], strides = [1, 1]} : vector<8x128xf32> to vector<8x32xf32>
    %370 = arith.negf %369 : vector<8x32xf32>
    %371 = math.exp %370 : vector<8x32xf32>
    %cst_84 = arith.constant 1.000000e+00 : f32
    %372 = vector.broadcast %cst_84 : f32 to vector<8x32xf32>
    %373 = arith.addf %372, %371 : vector<8x32xf32>
    %374 = arith.divf %372, %373 : vector<8x32xf32>
    %375 = vector.extract_strided_slice %362 {offsets = [0, 64], sizes = [8, 32], strides = [1, 1]} : vector<8x128xf32> to vector<8x32xf32>
    %376 = math.tanh %375 : vector<8x32xf32>
    %377 = vector.extract_strided_slice %362 {offsets = [0, 96], sizes = [8, 32], strides = [1, 1]} : vector<8x128xf32> to vector<8x32xf32>
    %378 = arith.negf %377 : vector<8x32xf32>
    %379 = math.exp %378 : vector<8x32xf32>
    %cst_85 = arith.constant 1.000000e+00 : f32
    %380 = vector.broadcast %cst_85 : f32 to vector<8x32xf32>
    %381 = arith.addf %380, %379 : vector<8x32xf32>
    %382 = arith.divf %380, %381 : vector<8x32xf32>
    %383 = arith.mulf %374, %322 : vector<8x32xf32>
    %384 = arith.mulf %368, %376 : vector<8x32xf32>
    %385 = arith.addf %383, %384 : vector<8x32xf32>
    %386 = math.tanh %385 : vector<8x32xf32>
    %387 = arith.mulf %382, %386 : vector<8x32xf32>
    %388 = arith.index_cast %328 : i32 to index
    %c0_86 = arith.constant 0 : index
    %389 = vector.load %arg13[%388, %c0_86] : memref<64x32xf32, #tpu.memory_space<vmem>>, vector<8x32xf32>
    tpu.vector_store %arg13[%388, %c0_86], %387 {strides = array<i32>} : memref<64x32xf32, #tpu.memory_space<vmem>>, vector<8x32xf32>,
    %c6_i32 = arith.constant 6 : i32
    %c8_i32_87 = arith.constant 8 : i32
    %390 = arith.muli %c6_i32, %c8_i32_87 : i32
    %391 = tpu.assume_multiple %390, 8 : i32
    %392 = arith.index_cast %391 : i32 to index
    %c0_88 = arith.constant 0 : index
    %393 = vector.load %arg12[%392, %c0_88] : memref<64x128xf32, #tpu.memory_space<vmem>>, vector<8x128xf32>
    %cst_89 = arith.constant dense<0.000000e+00> : vector<8x128xf32>
    %394 = tpu.matmul %357, %7, %cst_89 {dimension_numbers = #tpu.dot_dimension_numbers<[1], [0], [0], [1], [0, 0, 1, 1], [], []>} : vector<8x32xf32>, vector<32x128xf32>, vector<8x128xf32> -> vector<8x128xf32>
    %395 = arith.addf %393, %394 : vector<8x128xf32>
    %396 = vector.extract_strided_slice %395 {offsets = [0, 0], sizes = [8, 32], strides = [1, 1]} : vector<8x128xf32> to vector<8x32xf32>
    %397 = arith.negf %396 : vector<8x32xf32>
    %398 = math.exp %397 : vector<8x32xf32>
    %cst_90 = arith.constant 1.000000e+00 : f32
    %399 = vector.broadcast %cst_90 : f32 to vector<8x32xf32>
    %400 = arith.addf %399, %398 : vector<8x32xf32>
    %401 = arith.divf %399, %400 : vector<8x32xf32>
    %402 = vector.extract_strided_slice %395 {offsets = [0, 32], sizes = [8, 32], strides = [1, 1]} : vector<8x128xf32> to vector<8x32xf32>
    %403 = arith.negf %402 : vector<8x32xf32>
    %404 = math.exp %403 : vector<8x32xf32>
    %cst_91 = arith.constant 1.000000e+00 : f32
    %405 = vector.broadcast %cst_91 : f32 to vector<8x32xf32>
    %406 = arith.addf %405, %404 : vector<8x32xf32>
    %407 = arith.divf %405, %406 : vector<8x32xf32>
    %408 = vector.extract_strided_slice %395 {offsets = [0, 64], sizes = [8, 32], strides = [1, 1]} : vector<8x128xf32> to vector<8x32xf32>
    %409 = math.tanh %408 : vector<8x32xf32>
    %410 = vector.extract_strided_slice %395 {offsets = [0, 96], sizes = [8, 32], strides = [1, 1]} : vector<8x128xf32> to vector<8x32xf32>
    %411 = arith.negf %410 : vector<8x32xf32>
    %412 = math.exp %411 : vector<8x32xf32>
    %cst_92 = arith.constant 1.000000e+00 : f32
    %413 = vector.broadcast %cst_92 : f32 to vector<8x32xf32>
    %414 = arith.addf %413, %412 : vector<8x32xf32>
    %415 = arith.divf %413, %414 : vector<8x32xf32>
    %416 = arith.mulf %407, %355 : vector<8x32xf32>
    %417 = arith.mulf %401, %409 : vector<8x32xf32>
    %418 = arith.addf %416, %417 : vector<8x32xf32>
    %419 = math.tanh %418 : vector<8x32xf32>
    %420 = arith.mulf %415, %419 : vector<8x32xf32>
    %cst_93 = arith.constant dense<0.000000e+00> : vector<8x128xf32>
    %421 = tpu.matmul %420, %8, %cst_93 {dimension_numbers = #tpu.dot_dimension_numbers<[1], [0], [0], [1], [0, 0, 1, 1], [], []>} : vector<8x32xf32>, vector<32x128xf32>, vector<8x128xf32> -> vector<8x128xf32>
    %cst_94 = arith.constant dense<0.000000e+00> : vector<8x128xf32>
    %422 = tpu.matmul %387, %9, %cst_94 {dimension_numbers = #tpu.dot_dimension_numbers<[1], [0], [0], [1], [0, 0, 1, 1], [], []>} : vector<8x32xf32>, vector<32x128xf32>, vector<8x128xf32> -> vector<8x128xf32>
    %423 = arith.addf %421, %422 : vector<8x128xf32>
    %424 = vector.broadcast %10 : vector<1x128xf32> to vector<8x128xf32>
    %425 = arith.addf %423, %424 : vector<8x128xf32>
    %426 = vector.extract_strided_slice %425 {offsets = [0, 0], sizes = [8, 32], strides = [1, 1]} : vector<8x128xf32> to vector<8x32xf32>
    %427 = arith.negf %426 : vector<8x32xf32>
    %428 = math.exp %427 : vector<8x32xf32>
    %cst_95 = arith.constant 1.000000e+00 : f32
    %429 = vector.broadcast %cst_95 : f32 to vector<8x32xf32>
    %430 = arith.addf %429, %428 : vector<8x32xf32>
    %431 = arith.divf %429, %430 : vector<8x32xf32>
    %432 = vector.extract_strided_slice %425 {offsets = [0, 32], sizes = [8, 32], strides = [1, 1]} : vector<8x128xf32> to vector<8x32xf32>
    %433 = arith.negf %432 : vector<8x32xf32>
    %434 = math.exp %433 : vector<8x32xf32>
    %cst_96 = arith.constant 1.000000e+00 : f32
    %435 = vector.broadcast %cst_96 : f32 to vector<8x32xf32>
    %436 = arith.addf %435, %434 : vector<8x32xf32>
    %437 = arith.divf %435, %436 : vector<8x32xf32>
    %438 = vector.extract_strided_slice %425 {offsets = [0, 64], sizes = [8, 32], strides = [1, 1]} : vector<8x128xf32> to vector<8x32xf32>
    %439 = math.tanh %438 : vector<8x32xf32>
    %440 = vector.extract_strided_slice %425 {offsets = [0, 96], sizes = [8, 32], strides = [1, 1]} : vector<8x128xf32> to vector<8x32xf32>
    %441 = arith.negf %440 : vector<8x32xf32>
    %442 = math.exp %441 : vector<8x32xf32>
    %cst_97 = arith.constant 1.000000e+00 : f32
    %443 = vector.broadcast %cst_97 : f32 to vector<8x32xf32>
    %444 = arith.addf %443, %442 : vector<8x32xf32>
    %445 = arith.divf %443, %444 : vector<8x32xf32>
    %446 = arith.mulf %437, %385 : vector<8x32xf32>
    %447 = arith.mulf %431, %439 : vector<8x32xf32>
    %448 = arith.addf %446, %447 : vector<8x32xf32>
    %449 = math.tanh %448 : vector<8x32xf32>
    %450 = arith.mulf %445, %449 : vector<8x32xf32>
    %451 = arith.index_cast %391 : i32 to index
    %c0_98 = arith.constant 0 : index
    %452 = vector.load %arg13[%451, %c0_98] : memref<64x32xf32, #tpu.memory_space<vmem>>, vector<8x32xf32>
    tpu.vector_store %arg13[%451, %c0_98], %450 {strides = array<i32>} : memref<64x32xf32, #tpu.memory_space<vmem>>, vector<8x32xf32>,
    %c7_i32 = arith.constant 7 : i32
    %c8_i32_99 = arith.constant 8 : i32
    %453 = arith.muli %c7_i32, %c8_i32_99 : i32
    %454 = tpu.assume_multiple %453, 8 : i32
    %455 = arith.index_cast %454 : i32 to index
    %c0_100 = arith.constant 0 : index
    %456 = vector.load %arg12[%455, %c0_100] : memref<64x128xf32, #tpu.memory_space<vmem>>, vector<8x128xf32>
    %cst_101 = arith.constant dense<0.000000e+00> : vector<8x128xf32>
    %457 = tpu.matmul %420, %7, %cst_101 {dimension_numbers = #tpu.dot_dimension_numbers<[1], [0], [0], [1], [0, 0, 1, 1], [], []>} : vector<8x32xf32>, vector<32x128xf32>, vector<8x128xf32> -> vector<8x128xf32>
    %458 = arith.addf %456, %457 : vector<8x128xf32>
    %459 = vector.extract_strided_slice %458 {offsets = [0, 0], sizes = [8, 32], strides = [1, 1]} : vector<8x128xf32> to vector<8x32xf32>
    %460 = arith.negf %459 : vector<8x32xf32>
    %461 = math.exp %460 : vector<8x32xf32>
    %cst_102 = arith.constant 1.000000e+00 : f32
    %462 = vector.broadcast %cst_102 : f32 to vector<8x32xf32>
    %463 = arith.addf %462, %461 : vector<8x32xf32>
    %464 = arith.divf %462, %463 : vector<8x32xf32>
    %465 = vector.extract_strided_slice %458 {offsets = [0, 32], sizes = [8, 32], strides = [1, 1]} : vector<8x128xf32> to vector<8x32xf32>
    %466 = arith.negf %465 : vector<8x32xf32>
    %467 = math.exp %466 : vector<8x32xf32>
    %cst_103 = arith.constant 1.000000e+00 : f32
    %468 = vector.broadcast %cst_103 : f32 to vector<8x32xf32>
    %469 = arith.addf %468, %467 : vector<8x32xf32>
    %470 = arith.divf %468, %469 : vector<8x32xf32>
    %471 = vector.extract_strided_slice %458 {offsets = [0, 64], sizes = [8, 32], strides = [1, 1]} : vector<8x128xf32> to vector<8x32xf32>
    %472 = math.tanh %471 : vector<8x32xf32>
    %473 = vector.extract_strided_slice %458 {offsets = [0, 96], sizes = [8, 32], strides = [1, 1]} : vector<8x128xf32> to vector<8x32xf32>
    %474 = arith.negf %473 : vector<8x32xf32>
    %475 = math.exp %474 : vector<8x32xf32>
    %cst_104 = arith.constant 1.000000e+00 : f32
    %476 = vector.broadcast %cst_104 : f32 to vector<8x32xf32>
    %477 = arith.addf %476, %475 : vector<8x32xf32>
    %478 = arith.divf %476, %477 : vector<8x32xf32>
    %479 = arith.mulf %470, %418 : vector<8x32xf32>
    %480 = arith.mulf %464, %472 : vector<8x32xf32>
    %481 = arith.addf %479, %480 : vector<8x32xf32>
    %482 = math.tanh %481 : vector<8x32xf32>
    %483 = arith.mulf %478, %482 : vector<8x32xf32>
    %cst_105 = arith.constant dense<0.000000e+00> : vector<8x128xf32>
    %484 = tpu.matmul %483, %8, %cst_105 {dimension_numbers = #tpu.dot_dimension_numbers<[1], [0], [0], [1], [0, 0, 1, 1], [], []>} : vector<8x32xf32>, vector<32x128xf32>, vector<8x128xf32> -> vector<8x128xf32>
    %cst_106 = arith.constant dense<0.000000e+00> : vector<8x128xf32>
    %485 = tpu.matmul %450, %9, %cst_106 {dimension_numbers = #tpu.dot_dimension_numbers<[1], [0], [0], [1], [0, 0, 1, 1], [], []>} : vector<8x32xf32>, vector<32x128xf32>, vector<8x128xf32> -> vector<8x128xf32>
    %486 = arith.addf %484, %485 : vector<8x128xf32>
    %487 = vector.broadcast %10 : vector<1x128xf32> to vector<8x128xf32>
    %488 = arith.addf %486, %487 : vector<8x128xf32>
    %489 = vector.extract_strided_slice %488 {offsets = [0, 0], sizes = [8, 32], strides = [1, 1]} : vector<8x128xf32> to vector<8x32xf32>
    %490 = arith.negf %489 : vector<8x32xf32>
    %491 = math.exp %490 : vector<8x32xf32>
    %cst_107 = arith.constant 1.000000e+00 : f32
    %492 = vector.broadcast %cst_107 : f32 to vector<8x32xf32>
    %493 = arith.addf %492, %491 : vector<8x32xf32>
    %494 = arith.divf %492, %493 : vector<8x32xf32>
    %495 = vector.extract_strided_slice %488 {offsets = [0, 32], sizes = [8, 32], strides = [1, 1]} : vector<8x128xf32> to vector<8x32xf32>
    %496 = arith.negf %495 : vector<8x32xf32>
    %497 = math.exp %496 : vector<8x32xf32>
    %cst_108 = arith.constant 1.000000e+00 : f32
    %498 = vector.broadcast %cst_108 : f32 to vector<8x32xf32>
    %499 = arith.addf %498, %497 : vector<8x32xf32>
    %500 = arith.divf %498, %499 : vector<8x32xf32>
    %501 = vector.extract_strided_slice %488 {offsets = [0, 64], sizes = [8, 32], strides = [1, 1]} : vector<8x128xf32> to vector<8x32xf32>
    %502 = math.tanh %501 : vector<8x32xf32>
    %503 = vector.extract_strided_slice %488 {offsets = [0, 96], sizes = [8, 32], strides = [1, 1]} : vector<8x128xf32> to vector<8x32xf32>
    %504 = arith.negf %503 : vector<8x32xf32>
    %505 = math.exp %504 : vector<8x32xf32>
    %cst_109 = arith.constant 1.000000e+00 : f32
    %506 = vector.broadcast %cst_109 : f32 to vector<8x32xf32>
    %507 = arith.addf %506, %505 : vector<8x32xf32>
    %508 = arith.divf %506, %507 : vector<8x32xf32>
    %509 = arith.mulf %500, %448 : vector<8x32xf32>
    %510 = arith.mulf %494, %502 : vector<8x32xf32>
    %511 = arith.addf %509, %510 : vector<8x32xf32>
    %512 = math.tanh %511 : vector<8x32xf32>
    %513 = arith.mulf %508, %512 : vector<8x32xf32>
    %514 = arith.index_cast %454 : i32 to index
    %c0_110 = arith.constant 0 : index
    %515 = vector.load %arg13[%514, %c0_110] : memref<64x32xf32, #tpu.memory_space<vmem>>, vector<8x32xf32>
    tpu.vector_store %arg13[%514, %c0_110], %513 {strides = array<i32>} : memref<64x32xf32, #tpu.memory_space<vmem>>, vector<8x32xf32>,
    %c8_i32_111 = arith.constant 8 : i32
    %c0_112 = arith.constant 0 : index
    %c0_113 = arith.constant 0 : index
    %516 = vector.load %arg13[%c0_112, %c0_113] : memref<64x32xf32, #tpu.memory_space<vmem>>, vector<64x32xf32>
    %c0_114 = arith.constant 0 : index
    %c0_115 = arith.constant 0 : index
    %517 = vector.load %arg7[%c0_114, %c0_115] : memref<32x200xf32, #tpu.memory_space<vmem>>, vector<32x200xf32>
    %cst_116 = arith.constant dense<0.000000e+00> : vector<64x200xf32>
    %518 = tpu.matmul %516, %517, %cst_116 {dimension_numbers = #tpu.dot_dimension_numbers<[1], [0], [0], [1], [0, 0, 1, 1], [], []>} : vector<64x32xf32>, vector<32x200xf32>, vector<64x200xf32> -> vector<64x200xf32>
    %c0_117 = arith.constant 0 : index
    %c0_118 = arith.constant 0 : index
    %519 = vector.load %arg8[%c0_117, %c0_118] : memref<1x200xf32, #tpu.memory_space<vmem>>, vector<1x200xf32>
    %520 = vector.broadcast %519 : vector<1x200xf32> to vector<64x200xf32>
    %521 = arith.addf %518, %520 : vector<64x200xf32>
    %c0_119 = arith.constant 0 : index
    %c0_120 = arith.constant 0 : index
    %522 = vector.load %arg9[%c0_119, %c0_120] : memref<200x16xf32, #tpu.memory_space<vmem>>, vector<200x16xf32>
    %cst_121 = arith.constant dense<0.000000e+00> : vector<64x16xf32>
    %523 = tpu.matmul %521, %522, %cst_121 {dimension_numbers = #tpu.dot_dimension_numbers<[1], [0], [0], [1], [0, 0, 1, 1], [], []>} : vector<64x200xf32>, vector<200x16xf32>, vector<64x16xf32> -> vector<64x16xf32>
    %c0_122 = arith.constant 0 : index
    %c0_123 = arith.constant 0 : index
    %524 = vector.load %arg10[%c0_122, %c0_123] : memref<1x16xf32, #tpu.memory_space<vmem>>, vector<1x16xf32>
    %525 = vector.broadcast %524 : vector<1x16xf32> to vector<64x16xf32>
    %526 = arith.addf %523, %525 : vector<64x16xf32>
    %527 = math.tanh %526 : vector<64x16xf32>
    %c0_124 = arith.constant 0 : index
    %c0_125 = arith.constant 0 : index
    %528 = vector.load %arg11[%c0_124, %c0_125] : memref<64x16xf32, #tpu.memory_space<vmem>>, vector<64x16xf32>
    tpu.vector_store %arg11[%c0_124, %c0_125], %527 {strides = array<i32>} : memref<64x16xf32, #tpu.memory_space<vmem>>, vector<64x16xf32>,
    return
  }
}

</mosaic_0001>

<bundles_post_ra>
// kernel: was_generator_forward.1
= control target key start
LH: loop header
LB: loop body
LE: loop exit
PB: predicated region body
PF: predicated region fallthrough
CT: control target
= control target key end

     0   :  { %v3663_v0 = vmov 0.0|0.0   ;;  %vm3664_vm0 = vmmov 0   ;;  %v3665_v6 = vmov 0.0   ;;  %vm86_vm1 = vcmask 588800   ;;  %s3667_s29 = smov 32   ;;  %s4493_s1 = inlined_call_operand.vmem [shape: f32[200,128], index: 1, kind: input, shape index: {}]   ;;  %s4494_s0 = inlined_call_operand.vmem [shape: f32[64,200], index: 0, kind: input, shape index: {}]   ;;  %s4495_s2 = inlined_call_operand.vmem [shape: f32[32,128], index: 2, kind: input, shape index: {}]   ;;  %s4496_s3 = inlined_call_operand.vmem [shape: f32[1,128], index: 3, kind: input, shape index: {}]   ;;  %s4497_s5 = inlined_call_operand.vmem [shape: f32[32,128], index: 5, kind: input, shape index: {}]   ;;  %s4498_s4 = inlined_call_operand.vmem [shape: f32[32,128], index: 4, kind: input, shape index: {}]   ;;  %s4499_s6 = inlined_call_operand.vmem [shape: f32[1,128], index: 6, kind: input, shape index: {}]   ;;  %s4500_s9 = inlined_call_operand.vmem [shape: f32[200,16], index: 9, kind: input, shape index: {}]   ;;  %s4501_s7 = inlined_call_operand.vmem [shape: f32[32,200], index: 7, kind: input, shape index: {}]   ;;  %s4502_s8 = inlined_call_operand.vmem [shape: f32[1,200], index: 8, kind: input, shape index: {}]   ;;  %s4503_s10 = inlined_call_operand.vmem [shape: f32[1,16], index: 10, kind: input, shape index: {}]   ;;  %s4504_s11 = inlined_call_operand.vmem [shape: f32[64,16], index: 11, kind: output, shape index: {}]  }
   0x1   :  { %3239 = vmatprep.subr.bf16.mxu0 %v3663_v0  ;;  %v54_v1 = vld [vmem:[%s4493_s1] sm:$0xff]  ;;  %v55_v2 = vld [vmem:[%s4493_s1 + $0x8] sm:$0xff]  ;;  %v56_v3 = vld [vmem:[%s4493_s1 + $0x10] sm:$0xff]  ;;  %3281 = vmatprep.subr.bf16.mxu1 %v3663_v0  ;;  %vm238_vm2 = vcmask 261120   ;;  %vm2777_vm3 = vcmask 130048  }
   0x2   :  { %v3240_v4 = vpack.c.bf16 %v55_v2, %v54_v1  ;;  %v57_v5 = vld [vmem:[%s4493_s1 + $0x18] sm:$0xff]  ;;  %2994 = vmatprep.mubr.msk.f32.mxu1 %vm3664_vm0, %v3665_v6  ;;  %v58_v8 = vld [vmem:[%s4493_s1 + $0x20] sm:$0xff]  ;;  %v59_v9 = vld [vmem:[%s4493_s1 + $0x28] sm:$0xff] }
   0x3   :  { %v3243_v7 = vpack.c.bf16 %v57_v5, %v56_v3  ;;  %v3246_v10 = vpack.c.bf16 %v59_v9, %v58_v8  ;;  %v60_v11 = vld [vmem:[%s4493_s1 + $0x30] sm:$0xff]  ;;  %v61_v12 = vld [vmem:[%s4493_s1 + $0x38] sm:$0xff]  ;;  %v39_v13 = vld [vmem:[%s4494_s0 + $0x8] sm:$0xff] }
   0x4   :  { %3241 = vmatpush1.bf16.msra.mxu0 %v3240_v4  ;;  %2791 = vmatprep.mubr.msk.f32.mxu0 %vm86_vm1, %v39_v13  ;;  %v3249_v14 = vpack.c.bf16 %v61_v12, %v60_v11  ;;  %v62_v15 = vld [vmem:[%s4493_s1 + $0x40] sm:$0xff]  ;;  %v63_v16 = vld [vmem:[%s4493_s1 + $0x48] sm:$0xff]  ;;  %v64_v18 = vld [vmem:[%s4493_s1 + $0x50] sm:$0xff] }
   0x5   :  { %3242 = vmatprep.subr.bf16.mxu0 %v3663_v0  ;;  %v3252_v17 = vpack.c.bf16 %v63_v16, %v62_v15  ;;  %v65_v19 = vld [vmem:[%s4493_s1 + $0x58] sm:$0xff]  ;;  %v66_v21 = vld [vmem:[%s4493_s1 + $0x60] sm:$0xff]  ;;  %v67_v22 = vld [vmem:[%s4493_s1 + $0x68] sm:$0xff] }
   0x6   :  { %v3255_v20 = vpack.c.bf16 %v65_v19, %v64_v18  ;;  %v3258_v23 = vpack.c.bf16 %v67_v22, %v66_v21  ;;  %v68_v24 = vld [vmem:[%s4493_s1 + $0x70] sm:$0xff]  ;;  %v69_v25 = vld [vmem:[%s4493_s1 + $0x78] sm:$0xff]  ;;  %v70_v27 = vld [vmem:[%s4493_s1 + $0x80] sm:$0xff] }
   0x7   :  { %v3261_v26 = vpack.c.bf16 %v69_v25, %v68_v24  ;;  %v71_v28 = vld [vmem:[%s4493_s1 + $0x88] sm:$0xff]  ;;  %v72_v30 = vld [vmem:[%s4493_s1 + $0x90] sm:$0xff]  ;;  %v73_v31 = vld [vmem:[%s4493_s1 + $0x98] sm:$0xff] }
   0x8   :  { %3244 = vmatpush1.bf16.msra.mxu0 %v3243_v7  ;;  %v3264_v29 = vpack.c.bf16 %v71_v28, %v70_v27  ;;  %v3267_v32 = vpack.c.bf16 %v73_v31, %v72_v30  ;;  %v74_v33 = vld [vmem:[%s4493_s1 + $0xa0] sm:$0xff]  ;;  %v75_v34 = vld [vmem:[%s4493_s1 + $0xa8] sm:$0xff]  ;;  %v76_v36 = vld [vmem:[%s4493_s1 + $0xb0] sm:$0xff] }
   0x9   :  { %3245 = vmatprep.subr.bf16.mxu0 %v3663_v0  ;;  %v3270_v35 = vpack.c.bf16 %v75_v34, %v74_v33  ;;  %v77_v37 = vld [vmem:[%s4493_s1 + $0xb8] sm:$0xff]  ;;  %v224_v39 = vld [vmem:[%s4495_s2] sm:$0xff]  ;;  %v225_v40 = vld [vmem:[%s4495_s2 + $0x8] sm:$0xff] }
   0xa   :  { %v3273_v38 = vpack.c.bf16 %v77_v37, %v76_v36  ;;  %v78_v41 = vld [vmem:[%s4493_s1 + $0xc0] sm:$0xff]  ;;  %v3832_v43 = vpack.c.bf16 %v225_v40, %v224_v39  ;;  %v41_v44 = vld [vmem:[%s4494_s0 + $0x18] sm:$0xff]  ;;  %v226_v45 = vld [vmem:[%s4495_s2 + $0x10] sm:$0xff] }
   0xb   :  { %v38_v42 = vld [vmem:[%s4494_s0] sm:$0xff]  ;;  %v227_v46 = vld [vmem:[%s4495_s2 + $0x18] sm:$0xff]  ;;  %v40_v47 = vld [vmem:[%s4494_s0 + $0x10] sm:$0xff] }
   0xc   :  { %3247 = vmatpush1.bf16.msra.mxu0 %v3246_v10  ;;  %v3849_v48 = vpack.c.bf16 %v227_v46, %v226_v45  ;;  %v43_v49 = vld [vmem:[%s4494_s0 + $0x28] sm:$0xff]  ;;  %v42_v50 = vld [vmem:[%s4494_s0 + $0x20] sm:$0xff]  ;;  %v45_v51 = vld [vmem:[%s4494_s0 + $0x38] sm:$0xff] }
   0xd   :  { %3248 = vmatprep.subr.bf16.mxu0 %v3663_v0  ;;  %v44_v52 = vld [vmem:[%s4494_s0 + $0x30] sm:$0xff]  ;;  %v47_v53 = vld [vmem:[%s4494_s0 + $0x48] sm:$0xff]  ;;  %v46_v54 = vld [vmem:[%s4494_s0 + $0x40] sm:$0xff] }
   0xe   :  { %v49_v55 = vld [vmem:[%s4494_s0 + $0x58] sm:$0xff]  ;;  %v48_v56 = vld [vmem:[%s4494_s0 + $0x50] sm:$0xff]  ;;  %v51_v57 = vld [vmem:[%s4494_s0 + $0x68] sm:$0xff] }
   0xf   :  { %v50_v58 = vld [vmem:[%s4494_s0 + $0x60] sm:$0xff]  ;;  %v53_v59 = vld [vmem:[%s4494_s0 + $0x78] sm:$0xff]  ;;  %v52_v60 = vld [vmem:[%s4494_s0 + $0x70] sm:$0xff]  ;;  %s3666_s0 = smov 64  }
  0x10   :  { %3250 = vmatpush1.bf16.msra.mxu0 %v3249_v14  ;;  %v3908_v61 = vld [vmem:[%s4496_s3] ss:$0 sm:$0xff]  ;;  %v233_v14 = vld [vmem:[%s4497_s5 + $0x8] sm:$0xff]  ;;  %v234_v15 = vld [vmem:[%s4497_s5 + $0x10] sm:$0xff] }
  0x11   :  { %3251 = vmatprep.subr.bf16.mxu0 %v3663_v0  ;;  %v232_v13 = vld [vmem:[%s4497_s5] sm:$0xff]  ;;  %v230_v22 = vld [vmem:[%s4498_s4 + $0x10] sm:$0xff] }
  0x12   :  { %v3925_v16 = vpack.c.bf16 %v233_v14, %v232_v13  ;;  %v228_v19 = vld [vmem:[%s4498_s4] sm:$0xff] }
  0x13   :  { %v3978_v31 = vld [vmem:[%s4499_s6] ss:$0 sm:$0xff] }
  0x14   :  { %3253 = vmatpush1.bf16.msra.mxu0 %v3252_v17  ;;  %v235_v17 = vld [vmem:[%s4497_s5 + $0x18] sm:$0xff]  ;;  %3283 = vmatpush3.bf16.msra.mxu1 %v3925_v16 }
  0x15   :  { %3254 = vmatprep.subr.bf16.mxu0 %v3663_v0  ;;  %v3931_v18 = vpack.c.bf16 %v235_v17, %v234_v15  ;;  %3284 = vmatprep.subr.bf16.mxu1 %v3663_v0 }
  0x18   :  { %3256 = vmatpush1.bf16.msra.mxu0 %v3255_v20  ;;  %v229_v20 = vld [vmem:[%s4498_s4 + $0x8] sm:$0xff]  ;;  %3286 = vmatpush3.bf16.msra.mxu1 %v3931_v18 }
  0x19   :  { %3257 = vmatprep.subr.bf16.mxu0 %v3663_v0  ;;  %v3941_v21 = vpack.c.bf16 %v229_v20, %v228_v19  ;;  %3287 = vmatprep.subr.bf16.mxu1 %v3663_v0 }
  0x1b   :  { %2995 = vmatmul.mubr.f32.vlgmr.msra.gmra.mrb[0].mxu1 %v3665_v6 }
  0x1c   :  { %3259 = vmatpush1.bf16.msra.mxu0 %v3258_v23  ;;  %v231_v23 = vld [vmem:[%s4498_s4 + $0x18] sm:$0xff]  ;;  %3289 = vmatpush3.bf16.msra.mxu1 %v3941_v21 }
  0x1d   :  { %3260 = vmatprep.subr.bf16.mxu0 %v3663_v0  ;;  %v3953_v25 = vpack.c.bf16 %v231_v23, %v230_v22  ;;  %3005 = vmatprep.mubr.msk.f32.mxu1 %vm3664_vm0, %v3665_v6 }
  0x1e   :  { %3290 = vmatprep.subr.bf16.mxu1 %v3663_v0 }
  0x20   :  { %3262 = vmatpush1.bf16.msra.mxu0 %v3261_v26  ;;  %3292 = vmatpush3.bf16.msra.mxu1 %v3953_v25 }
  0x21   :  { %3263 = vmatprep.subr.bf16.mxu0 %v3663_v0  ;;  %3299 = vmatprep.subr.bf16.mxu1 %v3663_v0 }
  0x24   :  { %3265 = vmatpush1.bf16.msra.mxu0 %v3264_v29 }
  0x25   :  { %3266 = vmatprep.subr.bf16.mxu0 %v3663_v0 }
  0x28   :  { %3268 = vmatpush1.bf16.msra.mxu0 %v3267_v32 }
  0x29   :  { %3269 = vmatprep.subr.bf16.mxu0 %v3663_v0 }
  0x2c   :  { %3271 = vmatpush1.bf16.msra.mxu0 %v3270_v35 }
  0x2d   :  { %3272 = vmatprep.subr.bf16.mxu0 %v3663_v0 }
  0x30   :  { %3274 = vmatpush1.bf16.msra.mxu0 %v3273_v38 }
  0x31   :  { %159 = vmatprep.subr.mxu0 %v3665_v6 }
  0x34   :  { %160 = vmatpush1.msra.mxu0 %v78_v41 }
  0x35   :  { %176 = vmatmul.mubr.f32.vlgmr.msra.gmra.mrb[0].mxu0 %v38_v42  ;;  %3275 = vmatprep.subr.bf16.mxu0 %v3663_v0 }
  0x36   :  { %3277 = vmatpush3.bf16.msra.mxu0 %v3832_v43  ;;  %2792 = vmatprep.mubr.msk.f32.mxu0 %vm86_vm1, %v41_v44 }
  0x37   :  { %3278 = vmatprep.subr.bf16.mxu0 %v3663_v0 }
  0x39   :  { %181 = vmatmul.mubr.f32.gmra.mrb[2].mxu0 %v40_v47 }
  0x3a   :  { %2793 = vmatprep.mubr.msk.f32.mxu0 %vm86_vm1, %v43_v49  ;;  %3280 = vmatpush3.bf16.msra.mxu0 %v3849_v48 }
  0x3b   :  { %3293 = vmatprep.subr.bf16.mxu0 %v3663_v0 }
  0x3d   :  { %186 = vmatmul.mubr.f32.gmra.mrb[4].mxu0 %v42_v50 }
  0x3e   :  { %2794 = vmatprep.mubr.msk.f32.mxu0 %vm86_vm1, %v45_v51 }
  0x41   :  { %191 = vmatmul.mubr.f32.gmra.mrb[6].mxu0 %v44_v52 }
  0x42   :  { %2795 = vmatprep.mubr.msk.f32.mxu0 %vm86_vm1, %v47_v53 }
  0x45   :  { %196 = vmatmul.mubr.f32.gmra.mrb[8].mxu0 %v46_v54 }
  0x46   :  { %2796 = vmatprep.mubr.msk.f32.mxu0 %vm86_vm1, %v49_v55 }
  0x49   :  { %201 = vmatmul.mubr.f32.gmra.mrb[10].mxu0 %v48_v56 }
  0x4a   :  { %2797 = vmatprep.mubr.msk.f32.mxu0 %vm86_vm1, %v51_v57 }
  0x4d   :  { %206 = vmatmul.mubr.f32.gmra.mrb[12].mxu0 %v50_v58 }
  0x4e   :  { %2798 = vmatprep.mubr.msk.f32.mxu0 %vm86_vm1, %v53_v59 }
  0x51   :  { %211 = vmatmul.mubr.f32.gmra.mrb[14].mxu0 %v52_v60 }
  0x52   :  { %2983 = vmatprep.mubr.msk.f32.mxu0 %vm3664_vm0, %v3665_v6 }
  0x55   :  { %2984 = vmatmul.mubr.f32.vlgmr.msra.gmra.mrb[0].mxu0 %v3665_v6 }
  0x56   :  { %3295 = vmatpush3.bf16.msra.mxu0 %v3832_v43  ;;  %3016 = vmatprep.mubr.msk.f32.mxu0 %vm3664_vm0, %v3665_v6 }
  0x57   :  { %3296 = vmatprep.subr.bf16.mxu0 %v3663_v0 }
  0x5a   :  { %3298 = vmatpush3.bf16.msra.mxu0 %v3849_v48 }
  0x5b   :  { %3311 = vmatprep.subr.bf16.mxu0 %v3663_v0 }
  0xee   :  { %v403_v28 = vpop.f32.mrb[0].mxu1 }
  0xef   :  { %v2996_v29 = vpop.f32.mrb[1].mxu1 }
 0x128   :  { %v308_v62 = vpop.f32.mrb[0].mxu0 }
 0x129   :  { %v3489_v63 = vadd.f32 %v3908_v61, %v308_v62  ;;  %v2985_v1 = vpop.f32.mrb[1].mxu0 }
 0x12b   :  { %3518 = vtanh.f32 %v3489_v63  ;;  %v2799_v3 = vmul.f32 -1.442695, %v3489_v63 }
 0x12d   :  { %3520 = vpow2.f32 %v2799_v3 }
 0x135   :  { %v3519_v2 = vpop.eup %3518 }
 0x136   :  { %322 = vrot.lane.b32.xlu0 %v3519_v2, %s3666_s0 }
 0x137   :  { %v3521_v4 = vpop.eup %3520 }
 0x138   :  { %v316_v5 = vadd.f32 1.0, %v3521_v4 }
 0x13a   :  { %3522 = vrcp.f32 %v316_v5 }
 0x144   :  { %v3523_v7 = vpop.eup %3522 }
 0x145   :  { %v320_v10 = vmul.f32 0.0, %v3523_v7 }
 0x1a8   :  { %v323_v8 = vpop.permute.xlu0 %322 }
 0x1a9   :  { %v325_v9 = vmul.f32 %v3523_v7, %v323_v8 }
 0x1ab   :  { %327 = vrot.lane.b32.xlu0 %v325_v9, %s3667_s29 }
 0x21d   :  { %v328_v11 = vpop.permute.xlu0 %327 }
 0x21e   :  { %v3913_v12 = vadd.f32 %v328_v11, %v320_v10 }
 0x220   :  { %3524 = vtanh.f32 %v3913_v12 }
 0x22a   :  { %v3525_v24 = vpop.eup %3524 }
 0x22b   :  { %333 = vrot.lane.b32.xlu1 %v3525_v24, %s3666_s0 }
 0x29d   :  { %v334_v26 = vpop.permute.xlu1 %333 }
 0x29e   :  { %v336_v27 = vmul.f32 %v3523_v7, %v334_v26 }
 0x2a0   :  { %408 = vrot.lane.b32.xlu1 %v336_v27, %s3667_s29 }
 0x312   :  { %v409_v30 = vpop.permute.xlu1 %408 }
 0x313   :  { %3006 = vmatmul.mubr.msk.f32.vlgmr.msra.gmra.mrb[2].mxu1 %vm238_vm2, %v409_v30  ;;  %3017 = vmatmul.mubr.msk.f32.vlgmr.msra.gmra.mrb[2].mxu0 %vm238_vm2, %v409_v30 }
 0x314   :  { %3313 = vmatpush3.bf16.msra.mxu0 %v3832_v43  ;;  %3301 = vmatpush3.bf16.msra.mxu1 %v3925_v16 }
 0x315   :  { %3314 = vmatprep.subr.bf16.mxu0 %v3663_v0  ;;  %3302 = vmatprep.subr.bf16.mxu1 %v3663_v0 }
 0x316   :  { %3049 = vmatprep.mubr.msk.f32.mxu0 %vm3664_vm0, %v3665_v6  ;;  %3027 = vmatprep.mubr.msk.f32.mxu1 %vm3664_vm0, %v3665_v6 }
 0x318   :  { %3316 = vmatpush3.bf16.msra.mxu0 %v3849_v48  ;;  %3304 = vmatpush3.bf16.msra.mxu1 %v3931_v18 }
 0x319   :  { %3305 = vmatprep.subr.bf16.mxu1 %v3663_v0  ;;  %3329 = vmatprep.subr.bf16.mxu0 %v3663_v0 }
 0x3e6   :  { %v478_v32 = vpop.f32.mrb[2].mxu1  ;;  %v586_v33 = vpop.f32.mrb[2].mxu0 }
 0x3e7   :  { %v479_v34 = vadd.f32 %v478_v32, %v403_v28  ;;  %v3490_v35 = vadd.f32 %v3908_v61, %v586_v33  ;;  %v3007_v36 = vpop.f32.mrb[3].mxu1  ;;  %v3018_v37 = vpop.f32.mrb[3].mxu0 }
 0x3e9   :  { %v488_v38 = vadd.f32 %v3978_v31, %v479_v34  ;;  %3526 = vtanh.f32 %v3490_v35  ;;  %v2804_v41 = vmul.f32 -1.442695, %v3490_v35 }
 0x3eb   :  { %3528 = vtanh.f32 %v488_v38  ;;  %v2802_v42 = vmul.f32 -1.442695, %v488_v38 }
 0x3ec   :  { %3530 = vpow2.f32 %v2804_v41 }
 0x3ed   :  { %3532 = vpow2.f32 %v2802_v42 }
 0x3f3   :  { %v3527_v39 = vpop.eup %3526 }
 0x3f4   :  { %600 = vrot.lane.b32.xlu1 %v3527_v39, %s3666_s0 }
 0x3f5   :  { %v3529_v40 = vpop.eup %3528 }
 0x3f6   :  { %498 = vrot.lane.b32.xlu0 %v3529_v40, %s3666_s0  ;;  %v3531_v44 = vpop.eup %3530 }
 0x3f7   :  { %v3533_v45 = vpop.eup %3532  ;;  %v594_v46 = vadd.f32 1.0, %v3531_v44 }
 0x3f8   :  { %v492_v47 = vadd.f32 1.0, %v3533_v45 }
 0x3f9   :  { %3534 = vrcp.f32 %v594_v46 }
 0x3fa   :  { %3536 = vrcp.f32 %v492_v47 }
 0x403   :  { %v3535_v49 = vpop.eup %3534 }
 0x404   :  { %v3537_v52 = vpop.eup %3536  ;;  %v598_v55 = vmul.f32 %v3535_v49, %v3913_v12 }
 0x405   :  { %v496_v58 = vmul.f32 0.0, %v3537_v52 }
 0x466   :  { %v601_v50 = vpop.permute.xlu1 %600 }
 0x467   :  { %v603_v51 = vmul.f32 %v3535_v49, %v601_v50 }
 0x468   :  { %v499_v53 = vpop.permute.xlu0 %498 }
 0x469   :  { %v501_v54 = vmul.f32 %v3537_v52, %v499_v53  ;;  %605 = vrot.lane.b32.xlu1 %v603_v51, %s3667_s29 }
 0x46b   :  { %503 = vrot.lane.b32.xlu0 %v501_v54, %s3667_s29 }
 0x4db   :  { %v606_v56 = vpop.permute.xlu1 %605 }
 0x4dc   :  { %v3987_v57 = vadd.f32 %v606_v56, %v598_v55 }
 0x4dd   :  { %v504_v59 = vpop.permute.xlu0 %503 }
 0x4de   :  { %3538 = vtanh.f32 %v3987_v57  ;;  %v3990_v60 = vadd.f32 %v504_v59, %v496_v58 }
 0x4e0   :  { %3540 = vtanh.f32 %v3990_v60 }
 0x4e8   :  { %v3539_v62 = vpop.eup %3538 }
 0x4e9   :  { %611 = vrot.lane.b32.xlu1 %v3539_v62, %s3666_s0 }
 0x4ea   :  { %v3541_v63 = vpop.eup %3540 }
 0x4eb   :  { %509 = vrot.lane.b32.xlu0 %v3541_v63, %s3666_s0 }
 0x55b   :  { %v612_v1 = vpop.permute.xlu1 %611 }
 0x55c   :  { %v614_v2 = vmul.f32 %v3535_v49, %v612_v1 }
 0x55d   :  { %v510_v3 = vpop.permute.xlu0 %509 }
 0x55e   :  { %v512_v4 = vmul.f32 %v3537_v52, %v510_v3  ;;  %688 = vrot.lane.b32.xlu1 %v614_v2, %s3667_s29 }
 0x560   :  { %514 = vrot.lane.b32.xlu0 %v512_v4, %s3667_s29 }
 0x5d0   :  { %v689_v5 = vpop.permute.xlu1 %688 }
 0x5d1   :  { %3050 = vmatmul.mubr.msk.f32.vlgmr.msra.gmra.mrb[4].mxu0 %vm238_vm2, %v689_v5 }
 0x5d2   :  { %v515_v7 = vpop.permute.xlu0 %514  ;;  %3331 = vmatpush3.bf16.msra.mxu0 %v3832_v43  ;;  %3082 = vmatprep.mubr.msk.f32.mxu0 %vm3664_vm0, %v3665_v6 }
 0x5d3   :  { %517 = vst.msk [vmem:[#allocation3] sm:$0xff] %vm238_vm2, %v515_v7  ;;  %3028 = vmatmul.mubr.msk.f32.vlgmr.msra.gmra.mrb[4].mxu1 %vm238_vm2, %v515_v7  ;;  %3332 = vmatprep.subr.bf16.mxu0 %v3663_v0 }
 0x5d4   :  { %3307 = vmatpush3.bf16.msra.mxu1 %v3941_v21  ;;  %3038 = vmatprep.mubr.msk.f32.mxu1 %vm3664_vm0, %v3665_v6 }
 0x5d5   :  { %3308 = vmatprep.subr.bf16.mxu1 %v3663_v0 }
 0x5d6   :  { %3334 = vmatpush3.bf16.msra.mxu0 %v3849_v48 }
 0x5d7   :  { %3347 = vmatprep.subr.bf16.mxu0 %v3663_v0 }
 0x5d8   :  { %3310 = vmatpush3.bf16.msra.mxu1 %v3953_v25 }
 0x5d9   :  { %3317 = vmatprep.subr.bf16.mxu1 %v3663_v0 }
 0x5db   :  { %3039 = vmatmul.mubr.msk.f32.vlgmr.msra.gmra.mrb[6].mxu1 %vm238_vm2, %v689_v5 }
 0x5dc   :  { %3319 = vmatpush3.bf16.msra.mxu1 %v3925_v16  ;;  %3060 = vmatprep.mubr.msk.f32.mxu1 %vm3664_vm0, %v3665_v6 }
 0x5dd   :  { %3320 = vmatprep.subr.bf16.mxu1 %v3663_v0 }
 0x5e0   :  { %3322 = vmatpush3.bf16.msra.mxu1 %v3931_v18 }
 0x5e1   :  { %3323 = vmatprep.subr.bf16.mxu1 %v3663_v0 }
 0x6a4   :  { %v861_v8 = vpop.f32.mrb[4].mxu0 }
 0x6a5   :  { %v3491_v9 = vadd.f32 %v3908_v61, %v861_v8  ;;  %v3051_v10 = vpop.f32.mrb[5].mxu0 }
 0x6a6   :  { %v683_v11 = vpop.f32.mrb[4].mxu1 }
 0x6a7   :  { %3542 = vtanh.f32 %v3491_v9  ;;  %v3029_v12 = vpop.f32.mrb[5].mxu1  ;;  %v2809_v22 = vmul.f32 -1.442695, %v3491_v9 }
 0x6ae   :  { %v758_v13 = vpop.f32.mrb[6].mxu1 }
 0x6af   :  { %v759_v14 = vadd.f32 %v758_v13, %v683_v11  ;;  %v3040_v15 = vpop.f32.mrb[7].mxu1 }
 0x6b1   :  { %v3543_v17 = vpop.eup %3542  ;;  %v762_v19 = vadd.f32 %v3978_v31, %v759_v14 }
 0x6b2   :  { %875 = vrot.lane.b32.xlu1 %v3543_v17, %s3666_s0 }
 0x6b3   :  { %3544 = vtanh.f32 %v762_v19  ;;  %v2807_v23 = vmul.f32 -1.442695, %v762_v19 }
 0x6b4   :  { %3546 = vpow2.f32 %v2809_v22 }
 0x6b5   :  { %3548 = vpow2.f32 %v2807_v23 }
 0x6bd   :  { %v3545_v20 = vpop.eup %3544 }
 0x6be   :  { %772 = vrot.lane.b32.xlu0 %v3545_v20, %s3666_s0  ;;  %v3547_v24 = vpop.eup %3546 }
 0x6bf   :  { %v869_v26 = vadd.f32 1.0, %v3547_v24  ;;  %v3549_v27 = vpop.eup %3548 }
 0x6c0   :  { %v766_v28 = vadd.f32 1.0, %v3549_v27 }
 0x6c1   :  { %3550 = vrcp.f32 %v869_v26 }
 0x6c2   :  { %3552 = vrcp.f32 %v766_v28 }
 0x6cb   :  { %v3551_v29 = vpop.eup %3550 }
 0x6cc   :  { %v3553_v33 = vpop.eup %3552  ;;  %v873_v36 = vmul.f32 %v3551_v29, %v3987_v57 }
 0x6cd   :  { %v770_v39 = vmul.f32 %v3553_v33, %v3990_v60 }
 0x724   :  { %v876_v30 = vpop.permute.xlu1 %875 }
 0x725   :  { %v878_v32 = vmul.f32 %v3551_v29, %v876_v30 }
 0x727   :  { %880 = vrot.lane.b32.xlu1 %v878_v32, %s3667_s29 }
 0x730   :  { %v773_v34 = vpop.permute.xlu0 %772 }
 0x731   :  { %v775_v35 = vmul.f32 %v3553_v33, %v773_v34 }
 0x733   :  { %777 = vrot.lane.b32.xlu0 %v775_v35, %s3667_s29 }
 0x799   :  { %v881_v37 = vpop.permute.xlu1 %880 }
 0x79a   :  { %v4026_v38 = vadd.f32 %v881_v37, %v873_v36 }
 0x79c   :  { %3554 = vtanh.f32 %v4026_v38 }
 0x7a5   :  { %v778_v40 = vpop.permute.xlu0 %777 }
 0x7a6   :  { %v3555_v41 = vpop.eup %3554  ;;  %v4030_v42 = vadd.f32 %v778_v40, %v770_v39 }
 0x7a7   :  { %886 = vrot.lane.b32.xlu1 %v3555_v41, %s3666_s0 }
 0x7a8   :  { %3556 = vtanh.f32 %v4030_v42 }
 0x7b2   :  { %v3557_v44 = vpop.eup %3556 }
 0x7b3   :  { %783 = vrot.lane.b32.xlu0 %v3557_v44, %s3666_s0 }
 0x819   :  { %v887_v45 = vpop.permute.xlu1 %886 }
 0x81a   :  { %v889_v46 = vmul.f32 %v3551_v29, %v887_v45 }
 0x81c   :  { %963 = vrot.lane.b32.xlu1 %v889_v46, %s3667_s29 }
 0x825   :  { %v784_v47 = vpop.permute.xlu0 %783 }
 0x826   :  { %v786_v49 = vmul.f32 %v3553_v33, %v784_v47 }
 0x828   :  { %788 = vrot.lane.b32.xlu0 %v786_v49, %s3667_s29 }
 0x88e   :  { %v964_v50 = vpop.permute.xlu1 %963 }
 0x88f   :  { %3083 = vmatmul.mubr.msk.f32.vlgmr.msra.gmra.mrb[6].mxu0 %vm238_vm2, %v964_v50 }
 0x890   :  { %3349 = vmatpush3.bf16.msra.mxu0 %v3832_v43  ;;  %3115 = vmatprep.mubr.msk.f32.mxu0 %vm3664_vm0, %v3665_v6 }
 0x891   :  { %3350 = vmatprep.subr.bf16.mxu0 %v3663_v0 }
 0x894   :  { %3352 = vmatpush3.bf16.msra.mxu0 %v3849_v48 }
 0x895   :  { %3365 = vmatprep.subr.bf16.mxu0 %v3663_v0 }
 0x89a   :  { %v789_v51 = vpop.permute.xlu0 %788 }
 0x89b   :  { %792 = vst.msk [vmem:[#allocation3 + $0x8] sm:$0xff] %vm238_vm2, %v789_v51  ;;  %3061 = vmatmul.mubr.msk.f32.vlgmr.msra.gmra.mrb[8].mxu1 %vm238_vm2, %v789_v51 }
 0x89c   :  { %3325 = vmatpush3.bf16.msra.mxu1 %v3941_v21  ;;  %3071 = vmatprep.mubr.msk.f32.mxu1 %vm3664_vm0, %v3665_v6 }
 0x89d   :  { %3326 = vmatprep.subr.bf16.mxu1 %v3663_v0 }
 0x8a0   :  { %3328 = vmatpush3.bf16.msra.mxu1 %v3953_v25 }
 0x8a1   :  { %3335 = vmatprep.subr.bf16.mxu1 %v3663_v0 }
 0x8a3   :  { %3072 = vmatmul.mubr.msk.f32.vlgmr.msra.gmra.mrb[10].mxu1 %vm238_vm2, %v964_v50 }
 0x8a4   :  { %3337 = vmatpush3.bf16.msra.mxu1 %v3925_v16  ;;  %3093 = vmatprep.mubr.msk.f32.mxu1 %vm3664_vm0, %v3665_v6 }
 0x8a5   :  { %3338 = vmatprep.subr.bf16.mxu1 %v3663_v0 }
 0x8a8   :  { %3340 = vmatpush3.bf16.msra.mxu1 %v3931_v18 }
 0x8a9   :  { %3341 = vmatprep.subr.bf16.mxu1 %v3663_v0 }
 0x962   :  { %v1136_v52 = vpop.f32.mrb[6].mxu0 }
 0x963   :  { %v3492_v53 = vadd.f32 %v3908_v61, %v1136_v52  ;;  %v3084_v54 = vpop.f32.mrb[7].mxu0 }
 0x965   :  { %3558 = vtanh.f32 %v3492_v53  ;;  %v2814_v1 = vmul.f32 -1.442695, %v3492_v53 }
 0x96e   :  { %v958_v55 = vpop.f32.mrb[8].mxu1 }
 0x96f   :  { %v3559_v56 = vpop.eup %3558  ;;  %v3062_v57 = vpop.f32.mrb[9].mxu1 }
 0x970   :  { %1150 = vrot.lane.b32.xlu1 %v3559_v56, %s3666_s0 }
 0x976   :  { %v1033_v58 = vpop.f32.mrb[10].mxu1 }
 0x977   :  { %v1034_v59 = vadd.f32 %v1033_v58, %v958_v55  ;;  %v3073_v60 = vpop.f32.mrb[11].mxu1 }
 0x979   :  { %v1037_v62 = vadd.f32 %v3978_v31, %v1034_v59 }
 0x97b   :  { %3560 = vtanh.f32 %v1037_v62  ;;  %v2812_v4 = vmul.f32 -1.442695, %v1037_v62 }
 0x97c   :  { %3562 = vpow2.f32 %v2814_v1 }
 0x985   :  { %v3561_v63 = vpop.eup %3560 }
 0x986   :  { %1047 = vrot.lane.b32.xlu0 %v3561_v63, %s3666_s0  ;;  %v3563_v2 = vpop.eup %3562 }
 0x987   :  { %v1144_v3 = vadd.f32 1.0, %v3563_v2 }
 0x989   :  { %3564 = vrcp.f32 %v1144_v3 }
 0x98a   :  { %3566 = vpow2.f32 %v2812_v4 }
 0x993   :  { %v3565_v5 = vpop.eup %3564 }
 0x994   :  { %v3567_v9 = vpop.eup %3566  ;;  %v1148_v14 = vmul.f32 %v3565_v5, %v4026_v38 }
 0x995   :  { %v1041_v10 = vadd.f32 1.0, %v3567_v9 }
 0x997   :  { %3568 = vrcp.f32 %v1041_v10 }
 0x9a1   :  { %v3569_v11 = vpop.eup %3568 }
 0x9a2   :  { %v1045_v20 = vmul.f32 %v3569_v11, %v4030_v42 }
 0x9e2   :  { %v1151_v7 = vpop.permute.xlu1 %1150 }
 0x9e3   :  { %v1153_v8 = vmul.f32 %v3565_v5, %v1151_v7 }
 0x9e5   :  { %1155 = vrot.lane.b32.xlu1 %v1153_v8, %s3667_s29 }
 0x9f8   :  { %v1048_v12 = vpop.permute.xlu0 %1047 }
 0x9f9   :  { %v1050_v13 = vmul.f32 %v3569_v11, %v1048_v12 }
 0x9fb   :  { %1052 = vrot.lane.b32.xlu0 %v1050_v13, %s3667_s29 }
 0xa57   :  { %v1156_v15 = vpop.permute.xlu1 %1155 }
 0xa58   :  { %v4066_v17 = vadd.f32 %v1156_v15, %v1148_v14 }
 0xa5a   :  { %3570 = vtanh.f32 %v4066_v17 }
 0xa64   :  { %v3571_v19 = vpop.eup %3570 }
 0xa65   :  { %1161 = vrot.lane.b32.xlu1 %v3571_v19, %s3666_s0 }
 0xa6d   :  { %v1053_v22 = vpop.permute.xlu0 %1052 }
 0xa6e   :  { %v4071_v23 = vadd.f32 %v1053_v22, %v1045_v20 }
 0xa70   :  { %3572 = vtanh.f32 %v4071_v23 }
 0xa7a   :  { %v3573_v24 = vpop.eup %3572 }
 0xa7b   :  { %1058 = vrot.lane.b32.xlu0 %v3573_v24, %s3666_s0 }
 0xad7   :  { %v1162_v26 = vpop.permute.xlu1 %1161 }
 0xad8   :  { %v1164_v27 = vmul.f32 %v3565_v5, %v1162_v26 }
 0xada   :  { %1238 = vrot.lane.b32.xlu1 %v1164_v27, %s3667_s29 }
 0xaed   :  { %v1059_v28 = vpop.permute.xlu0 %1058 }
 0xaee   :  { %v1061_v29 = vmul.f32 %v3569_v11, %v1059_v28 }
 0xaf0   :  { %1063 = vrot.lane.b32.xlu0 %v1061_v29, %s3667_s29 }
 0xb4c   :  { %v1239_v30 = vpop.permute.xlu1 %1238 }
 0xb4d   :  { %3116 = vmatmul.mubr.msk.f32.vlgmr.msra.gmra.mrb[8].mxu0 %vm238_vm2, %v1239_v30 }
 0xb4e   :  { %3367 = vmatpush3.bf16.msra.mxu0 %v3832_v43  ;;  %3148 = vmatprep.mubr.msk.f32.mxu0 %vm3664_vm0, %v3665_v6 }
 0xb4f   :  { %3368 = vmatprep.subr.bf16.mxu0 %v3663_v0 }
 0xb52   :  { %3370 = vmatpush3.bf16.msra.mxu0 %v3849_v48 }
 0xb53   :  { %3383 = vmatprep.subr.bf16.mxu0 %v3663_v0 }
 0xb62   :  { %v1064_v32 = vpop.permute.xlu0 %1063 }
 0xb63   :  { %1067 = vst.msk [vmem:[#allocation3 + $0x10] sm:$0xff] %vm238_vm2, %v1064_v32  ;;  %3094 = vmatmul.mubr.msk.f32.vlgmr.msra.gmra.mrb[12].mxu1 %vm238_vm2, %v1064_v32 }
 0xb64   :  { %3343 = vmatpush3.bf16.msra.mxu1 %v3941_v21  ;;  %3104 = vmatprep.mubr.msk.f32.mxu1 %vm3664_vm0, %v3665_v6 }
 0xb65   :  { %3344 = vmatprep.subr.bf16.mxu1 %v3663_v0 }
 0xb68   :  { %3346 = vmatpush3.bf16.msra.mxu1 %v3953_v25 }
 0xb69   :  { %3353 = vmatprep.subr.bf16.mxu1 %v3663_v0 }
 0xb6b   :  { %3105 = vmatmul.mubr.msk.f32.vlgmr.msra.gmra.mrb[14].mxu1 %vm238_vm2, %v1239_v30 }
 0xb6c   :  { %3355 = vmatpush3.bf16.msra.mxu1 %v3925_v16  ;;  %3126 = vmatprep.mubr.msk.f32.mxu1 %vm3664_vm0, %v3665_v6 }
 0xb6d   :  { %3356 = vmatprep.subr.bf16.mxu1 %v3663_v0 }
 0xb70   :  { %3358 = vmatpush3.bf16.msra.mxu1 %v3931_v18 }
 0xb71   :  { %3359 = vmatprep.subr.bf16.mxu1 %v3663_v0 }
 0xc20   :  { %v1411_v33 = vpop.f32.mrb[8].mxu0 }
 0xc21   :  { %v3493_v34 = vadd.f32 %v3908_v61, %v1411_v33  ;;  %v3117_v35 = vpop.f32.mrb[9].mxu0 }
 0xc23   :  { %3574 = vtanh.f32 %v3493_v34  ;;  %v2819_v45 = vmul.f32 -1.442695, %v3493_v34 }
 0xc2d   :  { %v3575_v36 = vpop.eup %3574 }
 0xc2e   :  { %1425 = vrot.lane.b32.xlu1 %v3575_v36, %s3666_s0 }
 0xc36   :  { %v1233_v37 = vpop.f32.mrb[12].mxu1 }
 0xc37   :  { %v3095_v38 = vpop.f32.mrb[13].mxu1 }
 0xc3e   :  { %v1308_v39 = vpop.f32.mrb[14].mxu1 }
 0xc3f   :  { %v1309_v40 = vadd.f32 %v1308_v39, %v1233_v37  ;;  %v3106_v41 = vpop.f32.mrb[15].mxu1 }
 0xc41   :  { %v1312_v42 = vadd.f32 %v3978_v31, %v1309_v40 }
 0xc43   :  { %3576 = vtanh.f32 %v1312_v42  ;;  %v2817_v51 = vmul.f32 -1.442695, %v1312_v42 }
 0xc44   :  { %3578 = vpow2.f32 %v2819_v45 }
 0xc4d   :  { %v3577_v44 = vpop.eup %3576 }
 0xc4e   :  { %1322 = vrot.lane.b32.xlu0 %v3577_v44, %s3666_s0  ;;  %v3579_v46 = vpop.eup %3578 }
 0xc4f   :  { %v1419_v47 = vadd.f32 1.0, %v3579_v46 }
 0xc51   :  { %3580 = vrcp.f32 %v1419_v47 }
 0xc52   :  { %3582 = vpow2.f32 %v2817_v51 }
 0xc5b   :  { %v3581_v49 = vpop.eup %3580 }
 0xc5c   :  { %v3583_v53 = vpop.eup %3582  ;;  %v1423_v58 = vmul.f32 %v3581_v49, %v4066_v17 }
 0xc5d   :  { %v1316_v54 = vadd.f32 1.0, %v3583_v53 }
 0xc5f   :  { %3584 = vrcp.f32 %v1316_v54 }
 0xc69   :  { %v3585_v55 = vpop.eup %3584 }
 0xc6a   :  { %v1320_v63 = vmul.f32 %v3585_v55, %v4071_v23 }
 0xca0   :  { %v1426_v50 = vpop.permute.xlu1 %1425 }
 0xca1   :  { %v1428_v52 = vmul.f32 %v3581_v49, %v1426_v50 }
 0xca3   :  { %1430 = vrot.lane.b32.xlu1 %v1428_v52, %s3667_s29 }
 0xcc0   :  { %v1323_v56 = vpop.permute.xlu0 %1322 }
 0xcc1   :  { %v1325_v57 = vmul.f32 %v3585_v55, %v1323_v56 }
 0xcc3   :  { %1327 = vrot.lane.b32.xlu0 %v1325_v57, %s3667_s29 }
 0xd15   :  { %v1431_v59 = vpop.permute.xlu1 %1430 }
 0xd16   :  { %v4106_v60 = vadd.f32 %v1431_v59, %v1423_v58 }
 0xd18   :  { %3586 = vtanh.f32 %v4106_v60 }
 0xd22   :  { %v3587_v62 = vpop.eup %3586 }
 0xd23   :  { %1436 = vrot.lane.b32.xlu1 %v3587_v62, %s3666_s0 }
 0xd35   :  { %v1328_v1 = vpop.permute.xlu0 %1327 }
 0xd36   :  { %v4111_v2 = vadd.f32 %v1328_v1, %v1320_v63 }
 0xd38   :  { %3588 = vtanh.f32 %v4111_v2 }
 0xd42   :  { %v3589_v3 = vpop.eup %3588 }
 0xd43   :  { %1333 = vrot.lane.b32.xlu0 %v3589_v3, %s3666_s0 }
 0xd95   :  { %v1437_v4 = vpop.permute.xlu1 %1436 }
 0xd96   :  { %v1439_v5 = vmul.f32 %v3581_v49, %v1437_v4 }
 0xd98   :  { %1513 = vrot.lane.b32.xlu1 %v1439_v5, %s3667_s29 }
 0xdb5   :  { %v1334_v7 = vpop.permute.xlu0 %1333 }
 0xdb6   :  { %v1336_v8 = vmul.f32 %v3585_v55, %v1334_v7 }
 0xdb8   :  { %1338 = vrot.lane.b32.xlu0 %v1336_v8, %s3667_s29 }
 0xe0a   :  { %v1514_v9 = vpop.permute.xlu1 %1513 }
 0xe0b   :  { %3149 = vmatmul.mubr.msk.f32.vlgmr.msra.gmra.mrb[10].mxu0 %vm238_vm2, %v1514_v9 }
 0xe0c   :  { %3385 = vmatpush3.bf16.msra.mxu0 %v3832_v43  ;;  %3181 = vmatprep.mubr.msk.f32.mxu0 %vm3664_vm0, %v3665_v6 }
 0xe0d   :  { %3386 = vmatprep.subr.bf16.mxu0 %v3663_v0 }
 0xe10   :  { %3388 = vmatpush3.bf16.msra.mxu0 %v3849_v48 }
 0xe11   :  { %3401 = vmatprep.subr.bf16.mxu0 %v3663_v0 }
 0xe2a   :  { %v1339_v10 = vpop.permute.xlu0 %1338 }
 0xe2b   :  { %1342 = vst.msk [vmem:[#allocation3 + $0x18] sm:$0xff] %vm238_vm2, %v1339_v10  ;;  %3127 = vmatmul.mubr.msk.f32.vlgmr.msra.gmra.mrb[16].mxu1 %vm238_vm2, %v1339_v10 }
 0xe2c   :  { %3361 = vmatpush3.bf16.msra.mxu1 %v3941_v21  ;;  %3137 = vmatprep.mubr.msk.f32.mxu1 %vm3664_vm0, %v3665_v6 }
 0xe2d   :  { %3362 = vmatprep.subr.bf16.mxu1 %v3663_v0 }
 0xe30   :  { %3364 = vmatpush3.bf16.msra.mxu1 %v3953_v25 }
 0xe31   :  { %3371 = vmatprep.subr.bf16.mxu1 %v3663_v0 }
 0xe33   :  { %3138 = vmatmul.mubr.msk.f32.vlgmr.msra.gmra.mrb[18].mxu1 %vm238_vm2, %v1514_v9 }
 0xe34   :  { %3373 = vmatpush3.bf16.msra.mxu1 %v3925_v16  ;;  %3159 = vmatprep.mubr.msk.f32.mxu1 %vm3664_vm0, %v3665_v6 }
 0xe35   :  { %3374 = vmatprep.subr.bf16.mxu1 %v3663_v0 }
 0xe38   :  { %3376 = vmatpush3.bf16.msra.mxu1 %v3931_v18 }
 0xe39   :  { %3377 = vmatprep.subr.bf16.mxu1 %v3663_v0 }
 0xede   :  { %v1686_v11 = vpop.f32.mrb[10].mxu0 }
 0xedf   :  { %v3494_v12 = vadd.f32 %v3908_v61, %v1686_v11  ;;  %v3150_v13 = vpop.f32.mrb[11].mxu0 }
 0xee1   :  { %3590 = vtanh.f32 %v3494_v12  ;;  %v2824_v26 = vmul.f32 -1.442695, %v3494_v12 }
 0xeeb   :  { %v3591_v14 = vpop.eup %3590 }
 0xeec   :  { %1700 = vrot.lane.b32.xlu1 %v3591_v14, %s3666_s0 }
 0xefe   :  { %v1508_v15 = vpop.f32.mrb[16].mxu1 }
 0xeff   :  { %v3128_v17 = vpop.f32.mrb[17].mxu1 }
 0xf06   :  { %v1583_v19 = vpop.f32.mrb[18].mxu1 }
 0xf07   :  { %v1584_v20 = vadd.f32 %v1583_v19, %v1508_v15  ;;  %v3139_v22 = vpop.f32.mrb[19].mxu1 }
 0xf09   :  { %v1587_v23 = vadd.f32 %v3978_v31, %v1584_v20 }
 0xf0b   :  { %3592 = vtanh.f32 %v1587_v23  ;;  %v2822_v33 = vmul.f32 -1.442695, %v1587_v23 }
 0xf0c   :  { %3594 = vpow2.f32 %v2824_v26 }
 0xf15   :  { %v3593_v24 = vpop.eup %3592 }
 0xf16   :  { %1597 = vrot.lane.b32.xlu0 %v3593_v24, %s3666_s0  ;;  %v3595_v27 = vpop.eup %3594 }
 0xf17   :  { %v1694_v28 = vadd.f32 1.0, %v3595_v27 }
 0xf19   :  { %3596 = vrcp.f32 %v1694_v28 }
 0xf1a   :  { %3598 = vpow2.f32 %v2822_v33 }
 0xf23   :  { %v3597_v29 = vpop.eup %3596 }
 0xf24   :  { %v3599_v34 = vpop.eup %3598  ;;  %v1698_v39 = vmul.f32 %v3597_v29, %v4106_v60 }
 0xf25   :  { %v1591_v35 = vadd.f32 1.0, %v3599_v34 }
 0xf27   :  { %3600 = vrcp.f32 %v1591_v35 }
 0xf31   :  { %v3601_v36 = vpop.eup %3600 }
 0xf32   :  { %v1595_v44 = vmul.f32 %v3601_v36, %v4111_v2 }
 0xf5e   :  { %v1701_v30 = vpop.permute.xlu1 %1700 }
 0xf5f   :  { %v1703_v32 = vmul.f32 %v3597_v29, %v1701_v30 }
 0xf61   :  { %1705 = vrot.lane.b32.xlu1 %v1703_v32, %s3667_s29 }
 0xf88   :  { %v1598_v37 = vpop.permute.xlu0 %1597 }
 0xf89   :  { %v1600_v38 = vmul.f32 %v3601_v36, %v1598_v37 }
 0xf8b   :  { %1602 = vrot.lane.b32.xlu0 %v1600_v38, %s3667_s29 }
 0xfd3   :  { %v1706_v40 = vpop.permute.xlu1 %1705 }
 0xfd4   :  { %v4146_v41 = vadd.f32 %v1706_v40, %v1698_v39 }
 0xfd6   :  { %3602 = vtanh.f32 %v4146_v41 }
 0xfe0   :  { %v3603_v42 = vpop.eup %3602 }
 0xfe1   :  { %1711 = vrot.lane.b32.xlu1 %v3603_v42, %s3666_s0 }
 0xffd   :  { %v1603_v45 = vpop.permute.xlu0 %1602 }
 0xffe   :  { %v4151_v46 = vadd.f32 %v1603_v45, %v1595_v44 }
0x1000   :  { %3604 = vtanh.f32 %v4151_v46 }
0x100a   :  { %v3605_v47 = vpop.eup %3604 }
0x100b   :  { %1608 = vrot.lane.b32.xlu0 %v3605_v47, %s3666_s0 }
0x1053   :  { %v1712_v49 = vpop.permute.xlu1 %1711 }
0x1054   :  { %v1714_v50 = vmul.f32 %v3597_v29, %v1712_v49 }
0x1056   :  { %1788 = vrot.lane.b32.xlu1 %v1714_v50, %s3667_s29 }
0x107d   :  { %v1609_v51 = vpop.permute.xlu0 %1608 }
0x107e   :  { %v1611_v52 = vmul.f32 %v3601_v36, %v1609_v51 }
0x1080   :  { %1613 = vrot.lane.b32.xlu0 %v1611_v52, %s3667_s29 }
0x10c8   :  { %v1789_v53 = vpop.permute.xlu1 %1788 }
0x10c9   :  { %3182 = vmatmul.mubr.msk.f32.vlgmr.msra.gmra.mrb[12].mxu0 %vm238_vm2, %v1789_v53 }
0x10ca   :  { %3403 = vmatpush3.bf16.msra.mxu0 %v3832_v43  ;;  %3214 = vmatprep.mubr.msk.f32.mxu0 %vm3664_vm0, %v3665_v6 }
0x10cb   :  { %3404 = vmatprep.subr.bf16.mxu0 %v3663_v0 }
0x10ce   :  { %3406 = vmatpush3.bf16.msra.mxu0 %v3849_v48 }
0x10cf   :  { %3427 = vmatprep.subr.bf16.mxu0 %v3663_v0 }
0x10f2   :  { %v1614_v54 = vpop.permute.xlu0 %1613 }
0x10f3   :  { %1617 = vst.msk [vmem:[#allocation3 + $0x20] sm:$0xff] %vm238_vm2, %v1614_v54  ;;  %3160 = vmatmul.mubr.msk.f32.vlgmr.msra.gmra.mrb[20].mxu1 %vm238_vm2, %v1614_v54 }
0x10f4   :  { %3379 = vmatpush3.bf16.msra.mxu1 %v3941_v21  ;;  %3170 = vmatprep.mubr.msk.f32.mxu1 %vm3664_vm0, %v3665_v6 }
0x10f5   :  { %3380 = vmatprep.subr.bf16.mxu1 %v3663_v0 }
0x10f8   :  { %3382 = vmatpush3.bf16.msra.mxu1 %v3953_v25 }
0x10f9   :  { %3389 = vmatprep.subr.bf16.mxu1 %v3663_v0 }
0x10fb   :  { %3171 = vmatmul.mubr.msk.f32.vlgmr.msra.gmra.mrb[22].mxu1 %vm238_vm2, %v1789_v53 }
0x10fc   :  { %3391 = vmatpush3.bf16.msra.mxu1 %v3925_v16  ;;  %3192 = vmatprep.mubr.msk.f32.mxu1 %vm3664_vm0, %v3665_v6 }
0x10fd   :  { %3392 = vmatprep.subr.bf16.mxu1 %v3663_v0 }
0x1100   :  { %3394 = vmatpush3.bf16.msra.mxu1 %v3931_v18 }
0x1101   :  { %3395 = vmatprep.subr.bf16.mxu1 %v3663_v0 }
0x119c   :  { %v1961_v43 = vpop.f32.mrb[12].mxu0 }
0x119d   :  { %v3495_v48 = vadd.f32 %v3908_v61, %v1961_v43  ;;  %v3183_v55 = vpop.f32.mrb[13].mxu0 }
0x119f   :  { %3606 = vtanh.f32 %v3495_v48  ;;  %v2829_v2 = vmul.f32 -1.442695, %v3495_v48 }
0x11a9   :  { %v3607_v56 = vpop.eup %3606 }
0x11aa   :  { %1975 = vrot.lane.b32.xlu1 %v3607_v56, %s3666_s0 }
0x11c6   :  { %v1783_v57 = vpop.f32.mrb[20].mxu1 }
0x11c7   :  { %v3161_v58 = vpop.f32.mrb[21].mxu1 }
0x11ce   :  { %v1858_v59 = vpop.f32.mrb[22].mxu1 }
0x11cf   :  { %v1859_v60 = vadd.f32 %v1858_v59, %v1783_v57  ;;  %v3172_v62 = vpop.f32.mrb[23].mxu1 }
0x11d1   :  { %v1862_v63 = vadd.f32 %v3978_v31, %v1859_v60 }
0x11d3   :  { %3608 = vtanh.f32 %v1862_v63  ;;  %v2827_v9 = vmul.f32 -1.442695, %v1862_v63 }
0x11d4   :  { %3610 = vpow2.f32 %v2829_v2 }
0x11dd   :  { %v3609_v1 = vpop.eup %3608 }
0x11de   :  { %1872 = vrot.lane.b32.xlu0 %v3609_v1, %s3666_s0  ;;  %v3611_v3 = vpop.eup %3610 }
0x11df   :  { %v1969_v4 = vadd.f32 1.0, %v3611_v3  ;;  %v2608_v3 = vld [vmem:[%s4500_s9] sm:$0xff] }
0x11e1   :  { %3612 = vrcp.f32 %v1969_v4  ;;  %v2609_v4 = vld [vmem:[%s4500_s9 + $0x8] sm:$0xff] }
0x11e2   :  { %3614 = vpow2.f32 %v2827_v9 }
0x11eb   :  { %v3613_v5 = vpop.eup %3612 }
0x11ec   :  { %v3615_v10 = vpop.eup %3614  ;;  %v1973_v15 = vmul.f32 %v3613_v5, %v4146_v41 }
0x11ed   :  { %v1866_v11 = vadd.f32 1.0, %v3615_v10  ;;  %v2612_v10 = vld [vmem:[%s4500_s9 + $0x20] sm:$0xff] }
0x11ef   :  { %3616 = vrcp.f32 %v1866_v11  ;;  %v2613_v11 = vld [vmem:[%s4500_s9 + $0x28] sm:$0xff] }
0x11f9   :  { %v3617_v12 = vpop.eup %3616 }
0x11fa   :  { %v1870_v22 = vmul.f32 %v3617_v12, %v4151_v46 }
0x121c   :  { %v1976_v7 = vpop.permute.xlu1 %1975 }
0x121d   :  { %v1978_v8 = vmul.f32 %v3613_v5, %v1976_v7  ;;  %v4237_v7 = vpack.c.bf16 %v2609_v4, %v2608_v3 }
0x121f   :  { %1980 = vrot.lane.b32.xlu1 %v1978_v8, %s3667_s29  ;;  %v2611_v8 = vld [vmem:[%s4500_s9 + $0x18] sm:$0xff] }
0x1250   :  { %v1873_v13 = vpop.permute.xlu0 %1872 }
0x1251   :  { %v1875_v14 = vmul.f32 %v3617_v12, %v1873_v13  ;;  %v2614_v13 = vld [vmem:[%s4500_s9 + $0x30] sm:$0xff] }
0x1253   :  { %1877 = vrot.lane.b32.xlu0 %v1875_v14, %s3667_s29  ;;  %v2615_v14 = vld [vmem:[%s4500_s9 + $0x38] sm:$0xff] }
0x1291   :  { %v1981_v17 = vpop.permute.xlu1 %1980 }
0x1292   :  { %v4186_v19 = vadd.f32 %v1981_v17, %v1973_v15  ;;  %v4263_v15 = vpack.c.bf16 %v2615_v14, %v2614_v13  ;;  %v2616_v17 = vld [vmem:[%s4500_s9 + $0x40] sm:$0xff] }
0x1294   :  { %3618 = vtanh.f32 %v4186_v19 }
0x129e   :  { %v3619_v20 = vpop.eup %3618 }
0x129f   :  { %1986 = vrot.lane.b32.xlu1 %v3619_v20, %s3666_s0 }
0x12c5   :  { %v1878_v23 = vpop.permute.xlu0 %1877 }
0x12c6   :  { %v4191_v24 = vadd.f32 %v1878_v23, %v1870_v22  ;;  %v2618_v22 = vld [vmem:[%s4500_s9 + $0x50] sm:$0xff]  ;;  %v2619_v23 = vld [vmem:[%s4500_s9 + $0x58] sm:$0xff] }
0x12c8   :  { %3620 = vtanh.f32 %v4191_v24 }
0x12d2   :  { %v3621_v26 = vpop.eup %3620 }
0x12d3   :  { %1883 = vrot.lane.b32.xlu0 %v3621_v26, %s3666_s0  ;;  %v2620_v26 = vld [vmem:[%s4500_s9 + $0x60] sm:$0xff] }
0x1311   :  { %v1987_v27 = vpop.permute.xlu1 %1986 }
0x1312   :  { %v1989_v28 = vmul.f32 %v3613_v5, %v1987_v27  ;;  %v2610_v5 = vld [vmem:[%s4500_s9 + $0x10] sm:$0xff]  ;;  %v2621_v27 = vld [vmem:[%s4500_s9 + $0x68] sm:$0xff] }
0x1313   :  { %v4243_v9 = vpack.c.bf16 %v2611_v8, %v2610_v5  ;;  %v3662_v8 = vld [vmem:[%s4499_s6] ss:$0 sm:$0xff] }
0x1314   :  { %2063 = vrot.lane.b32.xlu1 %v1989_v28, %s3667_s29  ;;  %v4293_v28 = vpack.c.bf16 %v2621_v27, %v2620_v26 }
0x1345   :  { %v1884_v29 = vpop.permute.xlu0 %1883 }
0x1346   :  { %v1886_v30 = vmul.f32 %v3617_v12, %v1884_v29  ;;  %v4253_v12 = vpack.c.bf16 %v2613_v11, %v2612_v10  ;;  %v2622_v29 = vld [vmem:[%s4500_s9 + $0x70] sm:$0xff] }
0x1348   :  { %1888 = vrot.lane.b32.xlu0 %v1886_v30, %s3667_s29  ;;  %v2623_v30 = vld [vmem:[%s4500_s9 + $0x78] sm:$0xff] }
0x1386   :  { %v2064_v32 = vpop.permute.xlu1 %2063 }
0x1387   :  { %3215 = vmatmul.mubr.msk.f32.vlgmr.msra.gmra.mrb[14].mxu0 %vm238_vm2, %v2064_v32 }
0x1388   :  { %3429 = vmatpush1.bf16.msra.mxu0 %v4237_v7 }
0x1389   :  { %3430 = vmatprep.subr.bf16.mxu0 %v3663_v0 }
0x138c   :  { %3432 = vmatpush1.bf16.msra.mxu0 %v4243_v9 }
0x138d   :  { %3433 = vmatprep.subr.bf16.mxu0 %v3663_v0 }
0x1390   :  { %3435 = vmatpush1.bf16.msra.mxu0 %v4253_v12 }
0x1391   :  { %3436 = vmatprep.subr.bf16.mxu0 %v3663_v0 }
0x1394   :  { %3438 = vmatpush1.bf16.msra.mxu0 %v4263_v15 }
0x1395   :  { %3439 = vmatprep.subr.bf16.mxu0 %v3663_v0 }
0x13ba   :  { %v1889_v33 = vpop.permute.xlu0 %1888 }
0x13bb   :  { %1892 = vst.msk [vmem:[#allocation3 + $0x28] sm:$0xff] %vm238_vm2, %v1889_v33  ;;  %3193 = vmatmul.mubr.msk.f32.vlgmr.msra.gmra.mrb[24].mxu1 %vm238_vm2, %v1889_v33 }
0x13bc   :  { %3397 = vmatpush3.bf16.msra.mxu1 %v3941_v21  ;;  %3203 = vmatprep.mubr.msk.f32.mxu1 %vm3664_vm0, %v3665_v6 }
0x13bd   :  { %3398 = vmatprep.subr.bf16.mxu1 %v3663_v0 }
0x13c0   :  { %3400 = vmatpush3.bf16.msra.mxu1 %v3953_v25 }
0x13c1   :  { %3407 = vmatprep.subr.bf16.mxu1 %v3663_v0 }
0x13c3   :  { %3204 = vmatmul.mubr.msk.f32.vlgmr.msra.gmra.mrb[26].mxu1 %vm238_vm2, %v2064_v32  ;;  %v4303_v32 = vpack.c.bf16 %v2623_v30, %v2622_v29 }
0x13c4   :  { %3409 = vmatpush3.bf16.msra.mxu1 %v3925_v16  ;;  %3225 = vmatprep.mubr.msk.f32.mxu1 %vm3664_vm0, %v3665_v6 }
0x13c5   :  { %3410 = vmatprep.subr.bf16.mxu1 %v3663_v0 }
0x13c8   :  { %3412 = vmatpush3.bf16.msra.mxu1 %v3931_v18 }
0x13c9   :  { %3413 = vmatprep.subr.bf16.mxu1 %v3663_v0 }
0x145a   :  { %v2236_v34 = vpop.f32.mrb[14].mxu0 }
0x145b   :  { %v3496_v35 = vadd.f32 %v3908_v61, %v2236_v34  ;;  %v3216_v36 = vpop.f32.mrb[15].mxu0  ;;  %v2452_v34 = vld [vmem:[%s4501_s7 + $0x8] sm:$0xff] }
0x145d   :  { %3622 = vtanh.f32 %v3496_v35  ;;  %v2834_v18 = vmul.f32 -1.442695, %v3496_v35  ;;  %v2454_v35 = vld [vmem:[%s4501_s7 + $0x18] sm:$0xff] }
0x145e   :  { %v3419_v36 = vpack.c.bf16 %v2454_v35, %v2452_v34 }
0x1467   :  { %v3623_v37 = vpop.eup %3622 }
0x1468   :  { %2250 = vrot.lane.b32.xlu1 %v3623_v37, %s3666_s0  ;;  %v2451_v37 = vld [vmem:[%s4501_s7] sm:$0xff] }
0x148e   :  { %v2058_v38 = vpop.f32.mrb[24].mxu1 }
0x148f   :  { %v3194_v39 = vpop.f32.mrb[25].mxu1 }
0x1490   :  { %v2456_v39 = vld [vmem:[%s4501_s7 + $0x28] sm:$0xff] }
0x1496   :  { %v2133_v16 = vpop.f32.mrb[26].mxu1 }
0x1497   :  { %v2134_v40 = vadd.f32 %v2133_v16, %v2058_v38  ;;  %v3205_v41 = vpop.f32.mrb[27].mxu1  ;;  %v2453_v38 = vld [vmem:[%s4501_s7 + $0x10] sm:$0xff] }
0x1498   :  { %v3421_v16 = vpack.c.bf16 %v2453_v38, %v2451_v37  ;;  %v2455_v41 = vld [vmem:[%s4501_s7 + $0x20] sm:$0xff] }
0x1499   :  { %v2137_v42 = vadd.f32 %v3978_v31, %v2134_v40 }
0x149b   :  { %3624 = vtanh.f32 %v2137_v42  ;;  %v2832_v50 = vmul.f32 -1.442695, %v2137_v42  ;;  %v2457_v42 = vld [vmem:[%s4501_s7 + $0x30] sm:$0xff] }
0x149c   :  { %3626 = vpow2.f32 %v2834_v18  ;;  %v3425_v18 = vpack.c.bf16 %v2457_v42, %v2455_v41 }
0x14a5   :  { %v3625_v44 = vpop.eup %3624 }
0x14a6   :  { %2147 = vrot.lane.b32.xlu0 %v3625_v44, %s3666_s0  ;;  %v3627_v45 = vpop.eup %3626 }
0x14a7   :  { %v2244_v61 = vadd.f32 1.0, %v3627_v45  ;;  %v2444_v45 = vld [vmem:[#allocation3 + $0x8] sm:$0xff] }
0x14a9   :  { %3628 = vrcp.f32 %v2244_v61  ;;  %v2445_v61 = vld [vmem:[#allocation3 + $0x10] sm:$0xff] }
0x14aa   :  { %3630 = vpow2.f32 %v2832_v50 }
0x14b3   :  { %v3629_v46 = vpop.eup %3628 }
0x14b4   :  { %v3631_v51 = vpop.eup %3630  ;;  %v2248_v43 = vmul.f32 %v3629_v46, %v4186_v19  ;;  %v2617_v19 = vld [vmem:[%s4500_s9 + $0x48] sm:$0xff] }
0x14b5   :  { %v2141_v52 = vadd.f32 1.0, %v3631_v51  ;;  %v4273_v20 = vpack.c.bf16 %v2617_v19, %v2616_v17  ;;  %v2624_v51 = vld [vmem:[%s4500_s9 + $0x80] sm:$0xff] }
0x14b7   :  { %3632 = vrcp.f32 %v2141_v52  ;;  %3441 = vmatpush1.bf16.msra.mxu0 %v4273_v20  ;;  %v2625_v52 = vld [vmem:[%s4500_s9 + $0x88] sm:$0xff] }
0x14b8   :  { %3442 = vmatprep.subr.bf16.mxu0 %v3663_v0 }
0x14c1   :  { %v3633_v31 = vpop.eup %3632 }
0x14c2   :  { %v2145_v57 = vmul.f32 %v3633_v31, %v4191_v24  ;;  %v4283_v24 = vpack.c.bf16 %v2619_v23, %v2618_v22 }
0x14c4   :  { %3444 = vmatpush1.bf16.msra.mxu0 %v4283_v24 }
0x14c5   :  { %3445 = vmatprep.subr.bf16.mxu0 %v3663_v0 }
0x14c8   :  { %3447 = vmatpush1.bf16.msra.mxu0 %v4293_v28 }
0x14c9   :  { %3448 = vmatprep.subr.bf16.mxu0 %v3663_v0 }
0x14cc   :  { %3450 = vmatpush1.bf16.msra.mxu0 %v4303_v32 }
0x14cd   :  { %3451 = vmatprep.subr.bf16.mxu0 %v3663_v0 }
0x14da   :  { %v2251_v47 = vpop.permute.xlu1 %2250 }
0x14db   :  { %v2253_v49 = vmul.f32 %v3629_v46, %v2251_v47  ;;  %v2447_v47 = vld [vmem:[#allocation3 + $0x20] sm:$0xff] }
0x14dd   :  { %2255 = vrot.lane.b32.xlu1 %v2253_v49, %s3667_s29  ;;  %v2448_v49 = vld [vmem:[#allocation3 + $0x28] sm:$0xff] }
0x1518   :  { %v2148_v53 = vpop.permute.xlu0 %2147 }
0x1519   :  { %v2150_v54 = vmul.f32 %v3633_v31, %v2148_v53  ;;  %v2626_v53 = vld [vmem:[%s4500_s9 + $0x90] sm:$0xff] }
0x151b   :  { %2152 = vrot.lane.b32.xlu0 %v2150_v54, %s3667_s29  ;;  %v2627_v54 = vld [vmem:[%s4500_s9 + $0x98] sm:$0xff] }
0x154f   :  { %v2256_v48 = vpop.permute.xlu1 %2255 }
0x1550   :  { %v2258_v55 = vadd.f32 %v2256_v48, %v2248_v43  ;;  %v3455_v43 = vpack.c.bf16 %v2627_v54, %v2626_v53  ;;  %v2628_v48 = vld [vmem:[%s4500_s9 + $0xa0] sm:$0xff] }
0x1552   :  { %3634 = vtanh.f32 %v2258_v55  ;;  %v2629_v55 = vld [vmem:[%s4500_s9 + $0xa8] sm:$0xff] }
0x155c   :  { %v3635_v56 = vpop.eup %3634 }
0x155d   :  { %2261 = vrot.lane.b32.xlu1 %v3635_v56, %s3666_s0  ;;  %v3458_v56 = vpack.c.bf16 %v2629_v55, %v2628_v48 }
0x158d   :  { %v2153_v58 = vpop.permute.xlu0 %2152 }
0x158e   :  { %v4222_v59 = vadd.f32 %v2153_v58, %v2145_v57  ;;  %v2630_v57 = vld [vmem:[%s4500_s9 + $0xb0] sm:$0xff]  ;;  %v2631_v58 = vld [vmem:[%s4500_s9 + $0xb8] sm:$0xff] }
0x1590   :  { %3636 = vtanh.f32 %v4222_v59 }
0x159a   :  { %v3637_v60 = vpop.eup %3636 }
0x159b   :  { %2158 = vrot.lane.b32.xlu0 %v3637_v60, %s3666_s0  ;;  %v3461_v60 = vpack.c.bf16 %v2631_v58, %v2630_v57 }
0x15cf   :  { %v2262_v62 = vpop.permute.xlu1 %2261 }
0x15d0   :  { %v2264_v63 = vmul.f32 %v3629_v46, %v2262_v62  ;;  %v2446_v46 = vld [vmem:[#allocation3 + $0x18] sm:$0xff]  ;;  %v2632_v62 = vld [vmem:[%s4500_s9 + $0xc0] sm:$0xff] }
0x15d2   :  { %2338 = vrot.lane.b32.xlu1 %v2264_v63, %s3667_s29 }
0x160d   :  { %v2159_v1 = vpop.permute.xlu0 %2158 }
0x160e   :  { %v2161_v2 = vmul.f32 %v3633_v31, %v2159_v1  ;;  %v3452_v31 = vpack.c.bf16 %v2625_v52, %v2624_v51 }
0x1610   :  { %2163 = vrot.lane.b32.xlu0 %v2161_v2, %s3667_s29  ;;  %3453 = vmatpush1.bf16.msra.mxu0 %v3452_v31  ;;  %v2461_v2 = vlaneseq }
0x1611   :  { %3454 = vmatprep.subr.bf16.mxu0 %v3663_v0 }
0x1612   :  { %v2462_v3 = vshrl.u32 %v2461_v2, 7 }
0x1614   :  { %3456 = vmatpush1.bf16.msra.mxu0 %v3455_v43  ;;  %v2463_v10 = vsub.s32 0, %v2462_v3 }
0x1615   :  { %3457 = vmatprep.subr.bf16.mxu0 %v3663_v0 }
0x1618   :  { %3459 = vmatpush1.bf16.msra.mxu0 %v3458_v56 }
0x1619   :  { %3460 = vmatprep.subr.bf16.mxu0 %v3663_v0 }
0x161c   :  { %3462 = vmatpush1.bf16.msra.mxu0 %v3461_v60 }
0x161d   :  { %2712 = vmatprep.subr.mxu0 %v3665_v6 }
0x1620   :  { %2713 = vmatpush1.msra.mxu0 %v2632_v62 }
0x1644   :  { %v2339_v44 = vpop.permute.xlu1 %2338 }
0x1682   :  { %v2164_v33 = vpop.permute.xlu0 %2163 }
0x1683   :  { %2167 = vst.msk [vmem:[#allocation3 + $0x30] sm:$0xff] %vm238_vm2, %v2164_v33  ;;  %3226 = vmatmul.mubr.msk.f32.vlgmr.msra.gmra.mrb[28].mxu1 %vm238_vm2, %v2164_v33 }
0x1684   :  { %3415 = vmatpush3.bf16.msra.mxu1 %v3941_v21  ;;  %3236 = vmatprep.mubr.msk.f32.mxu1 %vm3664_vm0, %v3665_v6  ;;  %v2458_v21 = vld [vmem:[%s4501_s7 + $0x38] sm:$0xff] }
0x1685   :  { %3416 = vmatprep.subr.bf16.mxu1 %v3663_v0  ;;  %v3423_v40 = vpack.c.bf16 %v2458_v21, %v2456_v39 }
0x1688   :  { %3418 = vmatpush3.bf16.msra.mxu1 %v3953_v25  ;;  %v2443_v25 = vld [vmem:[#allocation3] sm:$0xff] }
0x1689   :  { %3420 = vmatprep.subr.bf16.mxu1 %v3419_v36 }
0x168a   :  { %v2449_v50 = vld [vmem:[#allocation3 + $0x30] sm:$0xff] }
0x168b   :  { %3237 = vmatmul.mubr.msk.f32.vlgmr.msra.gmra.mrb[30].mxu1 %vm238_vm2, %v2339_v44  ;;  %v4431_v44 = vld [vmem:[%s4503_s10] ss:$0 sm:$0xff] }
0x168c   :  { %3422 = vmatpush1.bf16.msra.mxu1 %v3421_v16  ;;  %2559 = vmatprep.mubr.f32.mxu1 %v3665_v6 }
0x168d   :  { %3424 = vmatprep.subr.bf16.mxu1 %v3423_v40 }
0x1690   :  { %3426 = vmatpush1.bf16.msra.mxu1 %v3425_v18 }
0x1691   :  { %3463 = vmatprep.subr.bf16.mxu1 %v3663_v0 }
0x1693   :  { %2838 = vmatmul.mubr.msk.f32.vlgmr.msra.gmra.mrb[32].mxu1 %vm238_vm2, %v2443_v25 }
0x1694   :  { %2565 = vmatprep.mubr.f32.mxu1 %v3665_v6  ;;  %3476 = vmatpush1.bf16.msra.mxu1 %v4237_v7  ;;  %v2467_v7 = vsub.s32 1, %v2462_v3 }
0x1695   :  { %3464 = vmatprep.subr.bf16.mxu1 %v3663_v0 }
0x1697   :  { %2839 = vmatmul.mubr.msk.f32.gmra.mrb[34].mxu1 %vm238_vm2, %v2444_v45 }
0x1698   :  { %2571 = vmatprep.mubr.f32.mxu1 %v3665_v6  ;;  %3477 = vmatpush1.bf16.msra.mxu1 %v4243_v9 }
0x1699   :  { %3465 = vmatprep.subr.bf16.mxu1 %v3663_v0 }
0x169b   :  { %2840 = vmatmul.mubr.msk.f32.gmra.mrb[36].mxu1 %vm238_vm2, %v2445_v61 }
0x169c   :  { %2577 = vmatprep.mubr.f32.mxu1 %v3665_v6  ;;  %3478 = vmatpush1.bf16.msra.mxu1 %v4253_v12 }
0x169d   :  { %3466 = vmatprep.subr.bf16.mxu1 %v3663_v0 }
0x169f   :  { %2841 = vmatmul.mubr.msk.f32.gmra.mrb[38].mxu1 %vm238_vm2, %v2446_v46 }
0x16a0   :  { %2583 = vmatprep.mubr.f32.mxu1 %v3665_v6  ;;  %3479 = vmatpush1.bf16.msra.mxu1 %v4263_v15 }
0x16a1   :  { %3467 = vmatprep.subr.bf16.mxu1 %v3663_v0 }
0x16a3   :  { %2842 = vmatmul.mubr.msk.f32.gmra.mrb[40].mxu1 %vm238_vm2, %v2447_v47 }
0x16a4   :  { %2589 = vmatprep.mubr.f32.mxu1 %v3665_v6  ;;  %3480 = vmatpush1.bf16.msra.mxu1 %v4273_v20 }
0x16a5   :  { %3468 = vmatprep.subr.bf16.mxu1 %v3663_v0 }
0x16a7   :  { %2843 = vmatmul.mubr.msk.f32.gmra.mrb[42].mxu1 %vm238_vm2, %v2448_v49 }
0x16a8   :  { %2595 = vmatprep.mubr.f32.mxu1 %v3665_v6  ;;  %3481 = vmatpush1.bf16.msra.mxu1 %v4283_v24 }
0x16a9   :  { %3469 = vmatprep.subr.bf16.mxu1 %v3663_v0 }
0x16ab   :  { %2844 = vmatmul.mubr.msk.f32.gmra.mrb[44].mxu1 %vm238_vm2, %v2449_v50 }
0x16ac   :  { %3482 = vmatpush1.bf16.msra.mxu1 %v4293_v28  ;;  %2601 = vmatprep.mubr.f32.mxu1 %v3665_v6 }
0x16ad   :  { %3470 = vmatprep.subr.bf16.mxu1 %v3663_v0 }
0x16b0   :  { %3483 = vmatpush1.bf16.msra.mxu1 %v4303_v32 }
0x16b1   :  { %3471 = vmatprep.subr.bf16.mxu1 %v3663_v0 }
0x16b4   :  { %3484 = vmatpush1.bf16.msra.mxu1 %v3452_v31 }
0x16b5   :  { %3472 = vmatprep.subr.bf16.mxu1 %v3663_v0 }
0x16b8   :  { %3485 = vmatpush1.bf16.msra.mxu1 %v3455_v43 }
0x16b9   :  { %3473 = vmatprep.subr.bf16.mxu1 %v3663_v0 }
0x16bc   :  { %3486 = vmatpush1.bf16.msra.mxu1 %v3458_v56 }
0x16bd   :  { %3474 = vmatprep.subr.bf16.mxu1 %v3663_v0 }
0x16c0   :  { %3487 = vmatpush1.bf16.msra.mxu1 %v3461_v60 }
0x16c1   :  { %3475 = vmatprep.subr.mxu1 %v3665_v6  ;;  %v2459_v6 = vld [vmem:[%s4502_s8] sm:$0x3] }
0x16c2   :  { %v4413_v11 = vrot.slane %v2459_v6, %v2467_v7  ;;  %v4415_v12 = vrot.slane %v2459_v6, %v2463_v10 }
0x16c4   :  { %3488 = vmatpush1.msra.mxu1 %v2632_v62 }
0x1756   :  { %v2333_v63 = vpop.f32.mrb[28].mxu1 }
0x1757   :  { %v3227_v1 = vpop.f32.mrb[29].mxu1 }
0x175e   :  { %v2408_v4 = vpop.f32.mrb[30].mxu1 }
0x175f   :  { %v2409_v5 = vadd.f32 %v2408_v4, %v2333_v63  ;;  %v3238_v0 = vpop.f32.mrb[31].mxu1 }
0x1761   :  { %v2412_v9 = vadd.f32 %v3662_v8, %v2409_v5 }
0x1763   :  { %3638 = vtanh.f32 %v2412_v9  ;;  %v2837_v39 = vmul.f32 -1.442695, %v2412_v9 }
0x1765   :  { %3640 = vpow2.f32 %v2837_v39 }
0x1766   :  { %v2561_v13 = vpop.f32.mrb[32].mxu1 }
0x1767   :  { %v2563_v14 = vpop.f32.mrb[33].mxu1  ;;  %v2562_v17 = vadd.f32 %v2561_v13, %v4415_v12 }
0x1768   :  { %v2564_v15 = vadd.f32 %v2563_v14, %v4413_v11 }
0x176a   :  { %v2567_v19 = vpop.f32.mrb[34].mxu1  ;;  %2847 = vmatprep.mubr.msk.f32.mxu0 %vm86_vm1, %v2564_v15 }
0x176b   :  { %v2569_v20 = vpop.f32.mrb[35].mxu1  ;;  %2729 = vmatmul.mubr.f32.vlgmr.msra.gmra.mrb[16].mxu0 %v2562_v17  ;;  %v2568_v24 = vadd.f32 %v2567_v19, %v4415_v12 }
0x176c   :  { %v2570_v22 = vadd.f32 %v2569_v20, %v4413_v11 }
0x176d   :  { %v3639_v23 = vpop.eup %3638 }
0x176e   :  { %2422 = vrot.lane.b32.xlu0 %v3639_v23, %s3666_s0  ;;  %v2573_v26 = vpop.f32.mrb[36].mxu1  ;;  %2848 = vmatprep.mubr.msk.f32.mxu0 %vm86_vm1, %v2570_v22 }
0x176f   :  { %v2575_v27 = vpop.f32.mrb[37].mxu1  ;;  %2734 = vmatmul.mubr.f32.gmra.mrb[18].mxu0 %v2568_v24  ;;  %v2574_v29 = vadd.f32 %v2573_v26, %v4415_v12  ;;  %v3641_v21 = vpop.eup %3640 }
0x1770   :  { %v2576_v28 = vadd.f32 %v2575_v27, %v4413_v11  ;;  %v2416_v16 = vadd.f32 1.0, %v3641_v21 }
0x1772   :  { %v2579_v30 = vpop.f32.mrb[38].mxu1  ;;  %2849 = vmatprep.mubr.msk.f32.mxu0 %vm86_vm1, %v2576_v28  ;;  %3642 = vrcp.f32 %v2416_v16 }
0x1773   :  { %v2581_v32 = vpop.f32.mrb[39].mxu1  ;;  %2739 = vmatmul.mubr.f32.gmra.mrb[20].mxu0 %v2574_v29 }
0x1774   :  { %v2582_v60 = vadd.f32 %v2581_v32, %v4413_v11 }
0x1776   :  { %v2585_v33 = vpop.f32.mrb[40].mxu1 }
0x1777   :  { %v2587_v34 = vpop.f32.mrb[41].mxu1  ;;  %v2586_v1 = vadd.f32 %v2585_v33, %v4415_v12 }
0x1778   :  { %v2588_v63 = vadd.f32 %v2587_v34, %v4413_v11 }
0x177a   :  { %v2591_v35 = vpop.f32.mrb[42].mxu1 }
0x177b   :  { %v2593_v36 = vpop.f32.mrb[43].mxu1  ;;  %v2592_v3 = vadd.f32 %v2591_v35, %v4415_v12 }
0x177c   :  { %v3643_v40 = vpop.eup %3642  ;;  %v2594_v2 = vadd.f32 %v2593_v36, %v4413_v11 }
0x177d   :  { %v2420_v54 = vmul.f32 %v3643_v40, %v4222_v59  ;;  %v2580_v59 = vadd.f32 %v2579_v30, %v4415_v12 }
0x177e   :  { %v2597_v37 = vpop.f32.mrb[44].mxu1 }
0x177f   :  { %v2599_v38 = vpop.f32.mrb[45].mxu1  ;;  %v2598_v5 = vadd.f32 %v2597_v37, %v4415_v12 }
0x1780   :  { %v2600_v4 = vadd.f32 %v2599_v38, %v4413_v11 }
0x17e0   :  { %v2423_v41 = vpop.permute.xlu0 %2422 }
0x17e1   :  { %v2425_v42 = vmul.f32 %v3643_v40, %v2423_v41 }
0x17e3   :  { %2427 = vrot.lane.b32.xlu1 %v2425_v42, %s3667_s29 }
0x183e   :  { %v2730_v18 = vpop.f32.mrb[16].mxu0 }
0x183f   :  { %v2731_v25 = vadd.f32 %v4431_v44, %v2730_v18  ;;  %v2732_v45 = vpop.f32.mrb[17].mxu0 }
0x1841   :  { %3644 = vtanh.f32 %v2731_v25 }
0x1842   :  { %v2735_v61 = vpop.f32.mrb[18].mxu0 }
0x1843   :  { %v2736_v46 = vadd.f32 %v4431_v44, %v2735_v61  ;;  %v2737_v47 = vpop.f32.mrb[19].mxu0 }
0x1845   :  { %3646 = vtanh.f32 %v2736_v46 }
0x1846   :  { %v2740_v49 = vpop.f32.mrb[20].mxu0 }
0x1847   :  { %v2741_v50 = vadd.f32 %v4431_v44, %v2740_v49  ;;  %v2742_v51 = vpop.f32.mrb[21].mxu0 }
0x1849   :  { %3648 = vtanh.f32 %v2741_v50 }
0x184b   :  { %v3645_v52 = vpop.eup %3644 }
0x184c   :  { %2778 = vst.msk [vmem:[%s4504_s11] sm:$0xff] %vm2777_vm3, %v3645_v52 }
0x184f   :  { %v3647_v31 = vpop.eup %3646 }
0x1850   :  { %2779 = vst.msk [vmem:[%s4504_s11 + $0x8] sm:$0xff] %vm2777_vm3, %v3647_v31 }
0x1853   :  { %v3649_v53 = vpop.eup %3648 }
0x1854   :  { %2780 = vst.msk [vmem:[%s4504_s11 + $0x10] sm:$0xff] %vm2777_vm3, %v3649_v53 }
0x1855   :  { %v2428_v43 = vpop.permute.xlu1 %2427 }
0x1856   :  { %v2430_v48 = vadd.f32 %v2428_v43, %v2420_v54 }
0x1858   :  { %3650 = vtanh.f32 %v2430_v48 }
0x1862   :  { %v3651_v55 = vpop.eup %3650 }
0x1863   :  { %2433 = vrot.lane.b32.xlu0 %v3651_v55, %s3666_s0 }
0x18d5   :  { %v2434_v56 = vpop.permute.xlu0 %2433 }
0x18d6   :  { %v2436_v57 = vmul.f32 %v3643_v40, %v2434_v56 }
0x18d8   :  { %2438 = vrot.lane.b32.xlu1 %v2436_v57, %s3667_s29 }
0x194a   :  { %v2439_v58 = vpop.permute.xlu1 %2438 }
0x194b   :  { %2442 = vst.msk [vmem:[#allocation3 + $0x38] sm:$0xff] %vm238_vm2, %v2439_v58 }
0x1952   :  { %v2450_v62 = vld [vmem:[#allocation3 + $0x38] sm:$0xff] }
0x1953   :  { %2845 = vmatmul.mubr.msk.f32.gmra.mrb[46].mxu1 %vm238_vm2, %v2450_v62 }
0x1954   :  { %2850 = vmatprep.mubr.msk.f32.mxu1 %vm86_vm1, %v2582_v60 }
0x1957   :  { %2744 = vmatmul.mubr.f32.vlgmr.msra.gmra.mrb[48].mxu1 %v2580_v59 }
0x1958   :  { %2851 = vmatprep.mubr.msk.f32.mxu1 %vm86_vm1, %v2588_v63 }
0x195b   :  { %2749 = vmatmul.mubr.f32.gmra.mrb[50].mxu1 %v2586_v1 }
0x195c   :  { %2852 = vmatprep.mubr.msk.f32.mxu1 %vm86_vm1, %v2594_v2 }
0x195f   :  { %2754 = vmatmul.mubr.f32.gmra.mrb[52].mxu1 %v2592_v3 }
0x1960   :  { %2853 = vmatprep.mubr.msk.f32.mxu1 %vm86_vm1, %v2600_v4 }
0x1963   :  { %2759 = vmatmul.mubr.f32.gmra.mrb[54].mxu1 %v2598_v5 }
0x1a26   :  { %v2603_v0 = vpop.f32.mrb[46].mxu1 }
0x1a27   :  { %v2605_v7 = vpop.f32.mrb[47].mxu1  ;;  %v2604_v9 = vadd.f32 %v2603_v0, %v4415_v12 }
0x1a28   :  { %v2606_v8 = vadd.f32 %v2605_v7, %v4413_v11 }
0x1a2a   :  { %v2745_v6 = vpop.f32.mrb[48].mxu1  ;;  %2854 = vmatprep.mubr.msk.f32.mxu1 %vm86_vm1, %v2606_v8 }
0x1a2b   :  { %v2746_v10 = vadd.f32 %v4431_v44, %v2745_v6  ;;  %v2747_v13 = vpop.f32.mrb[49].mxu1  ;;  %2764 = vmatmul.mubr.f32.gmra.mrb[56].mxu1 %v2604_v9 }
0x1a2d   :  { %3652 = vtanh.f32 %v2746_v10 }
0x1a2e   :  { %v2750_v14 = vpop.f32.mrb[50].mxu1 }
0x1a2f   :  { %v2751_v15 = vadd.f32 %v4431_v44, %v2750_v14  ;;  %v2752_v17 = vpop.f32.mrb[51].mxu1 }
0x1a31   :  { %3654 = vtanh.f32 %v2751_v15 }
0x1a32   :  { %v2755_v19 = vpop.f32.mrb[52].mxu1 }
0x1a33   :  { %v2756_v20 = vadd.f32 %v4431_v44, %v2755_v19  ;;  %v2757_v22 = vpop.f32.mrb[53].mxu1 }
0x1a35   :  { %3656 = vtanh.f32 %v2756_v20 }
0x1a36   :  { %v2760_v11 = vpop.f32.mrb[54].mxu1 }
0x1a37   :  { %v3653_v12 = vpop.eup %3652  ;;  %v2761_v23 = vadd.f32 %v4431_v44, %v2760_v11  ;;  %v2762_v24 = vpop.f32.mrb[55].mxu1 }
0x1a38   :  { %2781 = vst.msk [vmem:[%s4504_s11 + $0x18] sm:$0xff] %vm2777_vm3, %v3653_v12 }
0x1a39   :  { %3658 = vtanh.f32 %v2761_v23 }
0x1a3b   :  { %v3655_v26 = vpop.eup %3654 }
0x1a3c   :  { %2782 = vst.msk [vmem:[%s4504_s11 + $0x20] sm:$0xff] %vm2777_vm3, %v3655_v26 }
0x1a3f   :  { %v3657_v27 = vpop.eup %3656 }
0x1a40   :  { %2783 = vst.msk [vmem:[%s4504_s11 + $0x28] sm:$0xff] %vm2777_vm3, %v3657_v27 }
0x1a43   :  { %v3659_v28 = vpop.eup %3658 }
0x1a44   :  { %2784 = vst.msk [vmem:[%s4504_s11 + $0x30] sm:$0xff] %vm2777_vm3, %v3659_v28 }
0x1afe   :  { %v2765_v29 = vpop.f32.mrb[56].mxu1 }
0x1aff   :  { %v2766_v30 = vadd.f32 %v4431_v44, %v2765_v29  ;;  %v2767_v32 = vpop.f32.mrb[57].mxu1 }
0x1b01   :  { %3660 = vtanh.f32 %v2766_v30 }
0x1b0b   :  { %v3661_v33 = vpop.eup %3660 }
0x1b0c   :  { %2785 = vst.msk [vmem:[%s4504_s11 + $0x38] sm:$0xff] %vm2777_vm3, %v3661_v33 }

</bundles_post_ra>
